<compile_context>
chip_gen: v6e
topology: v6e:2x2x1
jax: 0.10.0
libtpu: 0.0.40
codegen_flags: <defaults>
</compile_context>

<pallas_src>
import jax
import jax.numpy as jnp
from jax.experimental import pallas as pl
from jax.experimental.pallas import tpu as pltpu


def _round_up(x, m):
    return ((x + m - 1) // m) * m


# ---------------------------------------------------------------------------
# Kernels
# ---------------------------------------------------------------------------
def _mlp_classifier_kernel(x_ref, w1_ref, b1_ref, w2_ref, b2_ref, o_ref):
    """layer2(LeakyReLU(layer1(x))) for one (TILE_B, in_feats) batch tile.

    x_ref/w1_ref/w2_ref: bf16 (or f32) MXU operands; b1_ref: f32 (1, hidden)
    in VMEM; b2_ref: f32 (1, 1) scalar in SMEM.  All accumulation in f32.
    """
    # layer1: (tile_b, in) @ (in, hidden) on the MXU, f32 accumulation.
    h = jnp.dot(x_ref[...], w1_ref[...], preferred_element_type=jnp.float32)
    h = h + b1_ref[...]                 # f32 bias add (VPU)
    h = jnp.maximum(h, 0.2 * h)         # LeakyReLU(0.2): single vmax per vreg
    # layer2: (tile_b, hidden) @ (hidden, 1), f32 accumulation.
    out = jnp.dot(h.astype(w2_ref.dtype), w2_ref[...],
                  preferred_element_type=jnp.float32)
    o_ref[...] = (out + b2_ref[0, 0]).astype(o_ref.dtype)


def _linear_classifier_kernel(x_ref, w1_ref, b1_ref, o_ref):
    """layer1(x) for the linear=True Small_Classifier (b1 scalar in SMEM)."""
    out = jnp.dot(x_ref[...], w1_ref[...], preferred_element_type=jnp.float32)
    o_ref[...] = (out + b1_ref[0, 0]).astype(o_ref.dtype)


# ---------------------------------------------------------------------------
# Wrapper
# ---------------------------------------------------------------------------
def small_classifier_forward(x, params, *, linear=False, tile_b=1024,
                             use_bf16=True):
    """Pallas implementation of Small_Classifier.forward.

    x:      (B, in_feats) float32
    params: dict of weights (see init_params). Weights are (in, out).
    returns (B,) float32  — matches `.squeeze(1)` in the PyTorch module.
    """
    B, in_feats = x.shape
    compute_dtype = jnp.bfloat16 if use_bf16 else x.dtype
    x_c = x.astype(compute_dtype)

    # Batch tile: multiple of 8 sublanes, clamped for small B.
    # 1024 rows * 512 feats * 2 B * 2 buffers = 2 MiB -> safe on v7x's
    # 64 MiB VMEM (and trivially on v5e/v6e's 128 MiB).
    tile_b = max(8, min(_round_up(tile_b, 8), _round_up(B, 8)))
    grid = (pl.cdiv(B, tile_b),)

    x_spec = pl.BlockSpec((tile_b, in_feats), lambda i: (i, 0))
    out_spec = pl.BlockSpec((tile_b, 1), lambda i: (i, 0))
    compiler_params = pltpu.CompilerParams(
        dimension_semantics=("parallel",))   # shard batch across TCs on v7x

    if linear:
        w1 = params["w1"].astype(compute_dtype)              # (in, 1)
        b1 = params["b1"].astype(jnp.float32).reshape(1, 1)  # scalar -> SMEM
        flops = 2 * B * in_feats
        bytes_accessed = (x_c.size * x_c.dtype.itemsize
                          + w1.size * w1.dtype.itemsize + 4 + B * 4)
        out = pl.pallas_call(
            _linear_classifier_kernel,
            out_shape=jax.ShapeDtypeStruct((B, 1), jnp.float32),
            grid=grid,
            in_specs=[
                x_spec,
                pl.BlockSpec((in_feats, 1), lambda i: (0, 0)),   # pinned W1
                pl.BlockSpec((1, 1), lambda i: (0, 0),
                             memory_space=pltpu.SMEM),           # scalar b1
            ],
            out_specs=out_spec,
            compiler_params=compiler_params,
            cost_estimate=pl.CostEstimate(flops=flops, transcendentals=0,
                                          bytes_accessed=bytes_accessed),
        )(x_c, w1, b1)
    else:
        hidden = params["w1"].shape[1]
        w1 = params["w1"].astype(compute_dtype)                    # (in, hid)
        b1 = params["b1"].astype(jnp.float32).reshape(1, hidden)   # (1, hid)
        w2 = params["w2"].astype(compute_dtype)                    # (hid, 1)
        b2 = params["b2"].astype(jnp.float32).reshape(1, 1)        # scalar
        flops = 2 * B * in_feats * hidden + 2 * B * hidden
        bytes_accessed = (x_c.size * x_c.dtype.itemsize
                          + w1.size * w1.dtype.itemsize + hidden * 4
                          + w2.size * w2.dtype.itemsize + 4 + B * 4)
        out = pl.pallas_call(
            _mlp_classifier_kernel,
            out_shape=jax.ShapeDtypeStruct((B, 1), jnp.float32),
            grid=grid,
            in_specs=[
                x_spec,
                pl.BlockSpec((in_feats, hidden), lambda i: (0, 0)),  # W1 pinned
                pl.BlockSpec((1, hidden), lambda i: (0, 0)),         # b1 pinned
                pl.BlockSpec((hidden, 1), lambda i: (0, 0)),         # W2 pinned
                pl.BlockSpec((1, 1), lambda i: (0, 0),
                             memory_space=pltpu.SMEM),               # scalar b2
            ],
            out_specs=out_spec,
            compiler_params=compiler_params,
            cost_estimate=pl.CostEstimate(flops=flops, transcendentals=0,
                                          bytes_accessed=bytes_accessed),
        )(x_c, w1, b1, w2, b2)

    # PyTorch: .squeeze(1) — glue, stays in plain JAX.
    return jnp.squeeze(out, axis=1)


def init_params(key, in_feats=512, linear=False, hidden=512):
    """Deterministic synthetic init mimicking nn.Linear's U(-1/sqrt(fan_in), .)."""
    ks = jax.random.split(key, 4)
    bound1 = 1.0 / jnp.sqrt(in_feats)
    if linear:
        return {
            "w1": jax.random.uniform(ks[0], (in_feats, 1), jnp.float32, -bound1, bound1),
            "b1": jax.random.uniform(ks[1], (1, 1), jnp.float32, -bound1, bound1),
        }
    bound2 = 1.0 / jnp.sqrt(hidden)
    return {
        "w1": jax.random.uniform(ks[0], (in_feats, hidden), jnp.float32, -bound1, bound1),
        "b1": jax.random.uniform(ks[1], (1, hidden), jnp.float32, -bound1, bound1),
        "w2": jax.random.uniform(ks[2], (hidden, 1), jnp.float32, -bound2, bound2),
        "b2": jax.random.uniform(ks[3], (1, 1), jnp.float32, -bound2, bound2),
    }


# ---------------------------------------------------------------------------
# Pure-JAX references (bf16-matched and full f32) for self-check
# ---------------------------------------------------------------------------
def _reference(x, params, *, linear=False, use_bf16=True):
    cd = jnp.bfloat16 if use_bf16 else jnp.float32
    xc = x.astype(cd)
    if linear:
        out = jnp.dot(xc, params["w1"].astype(cd),
                      preferred_element_type=jnp.float32)
        out = out + params["b1"].astype(jnp.float32)
        return jnp.squeeze(out, axis=1)
    h = jnp.dot(xc, params["w1"].astype(cd), preferred_element_type=jnp.float32)
    h = h + params["b1"].astype(jnp.float32)
    h = jnp.maximum(h, 0.2 * h)
    out = jnp.dot(h.astype(cd), params["w2"].astype(cd),
                  preferred_element_type=jnp.float32)
    out = out + params["b2"].astype(jnp.float32)
    return jnp.squeeze(out, axis=1)


if __name__ == "__main__":
    key = jax.random.PRNGKey(0)
    k_x, k_p = jax.random.split(key)

    # Small demo shapes; B deliberately NOT a multiple of the tile to exercise
    # the cdiv grid + masked tail-tile writeback.
    B, IN_FEATS = 300, 512
    TILE_B = 128
    x = jax.random.normal(k_x, (B, IN_FEATS), dtype=jnp.float32)

    # Default (non-linear) variant.
    params = init_params(k_p, in_feats=IN_FEATS, linear=False)
    out = jax.block_until_ready(
        small_classifier_forward(x, params, linear=False, tile_b=TILE_B))
    assert out.shape == (B,), out.shape
    ref_bf16 = _reference(x, params, linear=False, use_bf16=True)
    ref_f32 = _reference(x, params, linear=False, use_bf16=False)
    assert jnp.allclose(out, ref_bf16, atol=2e-3, rtol=2e-3), "mismatch vs bf16 reference"
    assert jnp.allclose(out, ref_f32, atol=5e-2, rtol=5e-2), "mismatch vs f32 reference"

    # linear=True variant.
    params_lin = init_params(k_p, in_feats=IN_FEATS, linear=True)
    out_lin = jax.block_until_ready(
        small_classifier_forward(x, params_lin, linear=True, tile_b=TILE_B))
    assert out_lin.shape == (B,)
    assert jnp.allclose(out_lin, _reference(x, params_lin, linear=True, use_bf16=True),
                        atol=2e-3, rtol=2e-3)
    assert jnp.allclose(out_lin, _reference(x, params_lin, linear=True, use_bf16=False),
                        atol=5e-2, rtol=5e-2)

    print("KERNEL_OK")
</pallas_src>

<mosaic_0001>
module attributes {stable_mosaic.version = 11 : i64} {
  func.func @_mlp_classifier_kernel(%arg0: i32, %arg1: memref<128x512xbf16, #tpu.memory_space<vmem>>, %arg2: memref<512x512xbf16, #tpu.memory_space<vmem>>, %arg3: memref<1x512xf32, #tpu.memory_space<vmem>>, %arg4: memref<512x1xbf16, #tpu.memory_space<vmem>>, %arg5: memref<1x1xf32, #tpu.memory_space<smem>>, %arg6: memref<128x1xf32, #tpu.memory_space<vmem>>) attributes {dimension_semantics = [#tpu.dimension_semantics<parallel>], iteration_bounds = array<i64: 3>, scalar_prefetch = 0 : i64, scratch_operands = 0 : i64, tpu.core_type = #tpu.core_type<tc>, window_params = [{transform_indices = @transform_0, window_bounds = array<i64: 128, 512>}, {pipeline_mode = #tpu.pipeline_mode<synchronous>, transform_indices = @transform_1, window_bounds = array<i64: 512, 512>}, {pipeline_mode = #tpu.pipeline_mode<synchronous>, transform_indices = @transform_2, window_bounds = array<i64: 1, 512>}, {pipeline_mode = #tpu.pipeline_mode<synchronous>, transform_indices = @transform_3, window_bounds = array<i64: 512, 1>}, {transform_indices = @transform_4, window_bounds = array<i64: 1, 1>}, {transform_indices = @transform_5, window_bounds = array<i64: 128, 1>}]} {
    %c0 = arith.constant 0 : index
    %c0_0 = arith.constant 0 : index
    %0 = vector.load %arg1[%c0, %c0_0] : memref<128x512xbf16, #tpu.memory_space<vmem>>, vector<128x512xbf16>
    %c0_1 = arith.constant 0 : index
    %c0_2 = arith.constant 0 : index
    %1 = vector.load %arg2[%c0_1, %c0_2] : memref<512x512xbf16, #tpu.memory_space<vmem>>, vector<512x512xbf16>
    %cst = arith.constant dense<0.000000e+00> : vector<128x512xf32>
    %2 = tpu.matmul %0, %1, %cst {dimension_numbers = #tpu.dot_dimension_numbers<[1], [0], [0], [1], [0, 0, 1, 1], [], []>} : vector<128x512xbf16>, vector<512x512xbf16>, vector<128x512xf32> -> vector<128x512xf32>
    %c0_3 = arith.constant 0 : index
    %c0_4 = arith.constant 0 : index
    %3 = vector.load %arg3[%c0_3, %c0_4] : memref<1x512xf32, #tpu.memory_space<vmem>>, vector<1x512xf32>
    %4 = vector.broadcast %3 : vector<1x512xf32> to vector<128x512xf32>
    %5 = arith.addf %2, %4 : vector<128x512xf32>
    %cst_5 = arith.constant 2.000000e-01 : f32
    %6 = vector.broadcast %cst_5 : f32 to vector<128x512xf32>
    %7 = arith.mulf %6, %5 : vector<128x512xf32>
    %8 = arith.maximumf %5, %7 : vector<128x512xf32>
    %9 = arith.truncf %8 : vector<128x512xf32> to vector<128x512xbf16>
    %c0_6 = arith.constant 0 : index
    %c0_7 = arith.constant 0 : index
    %10 = vector.load %arg4[%c0_6, %c0_7] : memref<512x1xbf16, #tpu.memory_space<vmem>>, vector<512x1xbf16>
    %cst_8 = arith.constant dense<0.000000e+00> : vector<128x1xf32>
    %11 = tpu.matmul %9, %10, %cst_8 {dimension_numbers = #tpu.dot_dimension_numbers<[1], [0], [0], [1], [0, 0, 1, 1], [], []>} : vector<128x512xbf16>, vector<512x1xbf16>, vector<128x1xf32> -> vector<128x1xf32>
    %c0_9 = arith.constant 0 : index
    %c0_10 = arith.constant 0 : index
    %12 = memref.load %arg5[%c0_9, %c0_10] : memref<1x1xf32, #tpu.memory_space<smem>>
    %13 = vector.broadcast %12 : f32 to vector<128x1xf32>
    %14 = arith.addf %11, %13 : vector<128x1xf32>
    %c0_11 = arith.constant 0 : index
    %c0_12 = arith.constant 0 : index
    %15 = vector.load %arg6[%c0_11, %c0_12] : memref<128x1xf32, #tpu.memory_space<vmem>>, vector<128x1xf32>
    tpu.vector_store %arg6[%c0_11, %c0_12], %14 {strides = array<i32>} : memref<128x1xf32, #tpu.memory_space<vmem>>, vector<128x1xf32>,
    return
  }
  func.func @transform_0(%arg0: i32) -> (i32, i32) {
    %c0_i32 = arith.constant 0 : i32
    %c0_i32_0 = arith.constant 0 : i32
    return %arg0, %c0_i32 : i32, i32
  }
  func.func @transform_1(%arg0: i32) -> (i32, i32) {
    %c0_i32 = arith.constant 0 : i32
    %c0_i32_0 = arith.constant 0 : i32
    %c0_i32_1 = arith.constant 0 : i32
    return %c0_i32, %c0_i32_0 : i32, i32
  }
  func.func @transform_2(%arg0: i32) -> (i32, i32) {
    %c0_i32 = arith.constant 0 : i32
    %c0_i32_0 = arith.constant 0 : i32
    %c0_i32_1 = arith.constant 0 : i32
    return %c0_i32, %c0_i32_0 : i32, i32
  }
  func.func @transform_3(%arg0: i32) -> (i32, i32) {
    %c0_i32 = arith.constant 0 : i32
    %c0_i32_0 = arith.constant 0 : i32
    %c0_i32_1 = arith.constant 0 : i32
    return %c0_i32, %c0_i32_0 : i32, i32
  }
  func.func @transform_4(%arg0: i32) -> (i32, i32) {
    %c0_i32 = arith.constant 0 : i32
    %c0_i32_0 = arith.constant 0 : i32
    %c0_i32_1 = arith.constant 0 : i32
    return %c0_i32, %c0_i32_0 : i32, i32
  }
  func.func @transform_5(%arg0: i32) -> (i32, i32) {
    %c0_i32 = arith.constant 0 : i32
    %c0_i32_0 = arith.constant 0 : i32
    return %arg0, %c0_i32 : i32, i32
  }
}

</mosaic_0001>

<bundles_post_ra>
// kernel: tpu_custom_call.1
= control target key start
LH: loop header
LB: loop body
LE: loop exit
PB: predicated region body
PF: predicated region fallthrough
CT: control target
= control target key end

     0   :  { %s4200_s0 = inlined_call_operand.hbm [shape: bf16[300,512], index: 0, kind: input, shape index: {}]   ;;  %s4201_s1 = inlined_call_operand.hbm [shape: bf16[512,512], index: 1, kind: input, shape index: {}]   ;;  %s4202_s2 = inlined_call_operand.vmem [shape: f32[1,512], index: 2, kind: input, shape index: {}]   ;;  %s4203_s3 = inlined_call_operand.vmem [shape: bf16[512,1], index: 3, kind: input, shape index: {}]   ;;  %s4204_s4 = inlined_call_operand.<no memory space> [shape: f32[1,1], index: 4, kind: input, shape index: {}]   ;;  %s4205_s5 = inlined_call_operand.vmem [shape: f32[300,1], index: 5, kind: output, shape index: {}]  }
   0x1   :  { %10 = sst [smem:[#allocation2]] %s4204_s4 }
   0x2   :  { %11 = vsyncpa [#allocation4], 0 }
   0x3   :  { %13 = vsyncpa [#allocation4 + $0x1], 0 }
   0x4   :  { %14 = vsyncpa [#allocation6], 0  ;;  %s3574_s20 = smov 0   ;;  %s3576_s21 = smov 0  }
   0x5   :  { %s3578_s22 = smov 0   ;;  %s3580_s23 = smov 0  }
   0x6 LB: > { %s3593_s4 = sadd.s32 4294967295, %s3501_s23   ;;  %s3596_s24 = sadd.s32 1, %s3501_s23   ;;  %s3501_s23 = sphi %s3580_s23, %s4219_s23   ;;  %s3497_s22 = sphi %s3578_s22, %s4218_s22   ;;  %s3493_s21 = sphi %s3576_s21, %s4217_s21   ;;  %s3489_s20 = sphi %s3574_s20, %s4216_s20  }
   0x7   : > { %s24_s25 = ssub.s32 %s3501_s23, %s3596_s24  ;;  %s27_s26 = sadd.s32 1, %s3497_s22 }
   0x8   : > { %p25_p0 = scmp.eq.s32.totalorder %s24_s25, 0  ;;  %p34_p1 = scmp.ne.s32.totalorder %s3497_s22, %s3493_s21 }
   0x9   : > { %p35_p2 = scmp.eq.s32.totalorder %s3501_s23, 0  ;;  %p40_p3 = scmp.ne.s32.totalorder %s3493_s21, %s3489_s20 }
   0xa   : > { %s3606_s27 = scalar_select %p25_p0, %s3497_s22, %s27_s26  }
   0xb   : > { %p3608_p4 = por %p35_p2, %p34_p1  ;;  %p41_p5 = scmp.eq.s32.totalorder %s3593_s4, 0 }
   0xc   : > { %p148_p6 = scmp.eq.s32.totalorder %s3593_s4, 2  ;;  %p2636_p7 = scmp.ge.s32.totalorder %s3501_s23, 1 }
   0xd   : > { %p3617_p8 = por %p41_p5, %p40_p3  ;;  %p161_p9 = scmp.lt.s32.totalorder %s3501_s23, 4 }
   0xe   : > { %p3622_p10 = por %p148_p6, %p34_p1  ;;  %s3535_s7 = smov [#allocation5]  }
   0xf   : > { %s4208_s29 = scalar_select %p3617_p8, 1, 0 }
  0x10   : > { %s4209_s30 = scalar_select %p3622_p10, 1, 0 }
  0x11   : > { %p3626_p11 = pnand %p2636_p7, %p161_p9  ;;  %s173_s8 = sshll.u32 %s3535_s7, 4  ;;  %s174_s8 = int_to_ptr.vmem [resolvable:$true] %s173_s8 }
  0x12   : > { %s3390_s9 = scalar_lea.vmem %s174_s8, 16384  ;;  %p3398_p6 = scmp.lt.s32.totalorder %s174_s8, %s174_s8 }
  0x13   : > { %p3000_p12 = pneg %p3626_p11  ;;  %p3391_p2 = scmp.ne.s32.totalorder %s174_s8, %s3390_s9 }
  0x14   : > { %p3399_p8 = scmp.lt.s32.totalorder %s3390_s9, %s3390_s9 }
  0x15   : > { %p3001_p13 = pnand %p3000_p12, %p41_p5 }
  0x16   : > { %p3400_p10 = por %p3399_p8, %p3398_p6 }
  0x17   : > { %p3381_p0 = pneg %p3001_p13 }
  0x19   : > { %p3393_p3 = pnand %p3391_p2, %p3381_p0 }
  0x1b   : > { %p3394_p1 = pneg %p3393_p3 }
  0x1d   : > { %p3401_p7 = pnand %p3400_p10, %p3394_p1 }
  0x1f   : > { %3404 = shalt.err (!%p3401_p7)
}
  0x20   : > { %s3536_s10 = smov 256   ;;  %s3537_s11 = smov 16  }
  0x21   : > { %3003 = dma.hbm_to_vmem [thread:$0]  (!%p3001_p13), %s4201_s1, 16384, %s174_s8, [#allocation6], %s3536_s10, %s3536_s10, %s3537_s11  }
  0x22   : > { %p2638_p9 = scmp.ge.s32.totalorder %s3501_s23, 3 }
  0x24   : > { %192 = sbr.rel (%p2638_p9) target bundleno = 73 (0x49), region = 32 }
  0x29   : > { %195 = sbr.rel (!%p3608_p4) target bundleno = 73 (0x49), region = 36  ;;  %s196_s14 = sand.u32 (%p3608_p4), 1, %s3497_s22  }
  0x2a   : > { %s2640_s15 = sshll.u32 (%p3608_p4), %s3501_s23, 4  ;;  %s2639_s16 = sshll.u32 (%p3608_p4), %s196_s14, 8 }
  0x2b   : > { %s202_s17 = ssub.s32 (%p3608_p4), 38, %s2640_s15  ;;  %s3645_s20 = scalar_lea.sflag (%p3608_p4), [#allocation4], %s196_s14 }
  0x2c   : > { %p203_p8 = scmp.lt.s32.totalorder (%p3608_p4), %s202_s17, 16  ;;  %s200_s25 = scalar_lea.vmem (%p3608_p4), [#allocation3], %s2639_s16 }
  0x2e   : > { %s4221_s17 = smov (!%p203_p8, %s202_s17), 16 }
  0x2f   : > { %s3642_s18 = sshll.u32 %s4221_s17, 8 }
  0x30   : > { %s208_s19 = ssub.s32 4096, %s3642_s18 }
  0x31   : > { %209 = vsyncadd %s3645_s20, %s208_s19  ;;  %p2643_p4 = scmp.ne.s32.totalorder %s3642_s18, 0  ;;  %s2863_s26 = sshll.u32 %s3501_s23, 12 }
  0x32   : > { %s3653_s8 = scalar_lea.hbm %s4200_s0, %s2863_s26  ;;  %s215_s9 = sshll.u32 %s200_s25, 4  ;;  %s3655_s9 = int_to_ptr.vmem [resolvable:$true] %s215_s9 }
  0x33   : > { %s3405_s10 = scalar_lea.hbm %s3653_s8, %s3642_s18  ;;  %s3409_s23 = scalar_lea.hbm %s4200_s0, 9728 }
  0x34   : > { %p3406_p10 = scmp.ne.s32.totalorder %s3653_s8, %s3405_s10  ;;  %p3410_p0 = scmp.lt.s32.totalorder %s3653_s8, %s4200_s0 }
  0x35   : > { %p3411_p2 = scmp.lt.s32.totalorder %s3409_s23, %s3405_s10 }
  0x36   : > { %p3407_p12 = pnand %p3406_p10, %p2643_p4 }
  0x37   : > { %p3412_p3 = por %p3411_p2, %p3410_p0 }
  0x38   : > { %p3408_p13 = pneg %p3407_p12 }
  0x3a   : > { %p3413_p1 = pnand %p3412_p3, %p3408_p13 }
  0x3c   : > { %3416 = shalt.err (!%p3413_p1)
}
  0x3d   : > { %s3417_s15 = scalar_lea.vmem %s3655_s9, %s3642_s18  ;;  %s3538_s16 = smov [#allocation3]  }
  0x3e   : > { %p3418_p6 = scmp.ne.s32.totalorder %s3655_s9, %s3417_s15  ;;  %s3421_s17 = sshll.u32 %s3538_s16, 4  ;;  %s3422_s17 = int_to_ptr.vmem [resolvable:$false] %s3421_s17 }
  0x3f   : > { %s3423_s19 = scalar_lea.vmem %s3422_s17, 8192  ;;  %p3424_p8 = scmp.lt.s32.totalorder %s3655_s9, %s3422_s17 }
  0x40   : > { %p3419_p7 = pnand %p3418_p6, %p2643_p4  ;;  %p3425_p10 = scmp.lt.s32.totalorder %s3423_s19, %s3417_s15 }
  0x42   : > { %p3420_p9 = pneg %p3419_p7  ;;  %p3426_p12 = por %p3425_p10, %p3424_p8 }
  0x44   : > { %p3427_p0 = pnand %p3426_p12, %p3420_p9 }
  0x46   : > { %3430 = shalt.err (!%p3427_p0)
}
  0x47   : > { %s3539_s25 = smov 256   ;;  %s3540_s26 = smov 16  }
  0x48   : > { %221 = dma.hbm_to_vmem [thread:$0]  (%p2643_p4), %s3653_s8, %s3642_s18, %s3655_s9, %s3645_s20, %s3539_s25, %s3539_s25, %s3540_s26  }
  0x49 PF: > { %227 = sbr.rel (%p3626_p11) target bundleno = 721 (0x2d1), region = 40  ;;  %s3684_s28 = sand.u32 (!%p3626_p11), 1, %s3493_s21  }
  0x4a   : > { %s2649_s7 = sshll.u32 (!%p3626_p11), %s3684_s28, 8  ;;  %s230_s10 = scalar_lea.sflag (!%p3626_p11), [#allocation4], %s3684_s28 }
  0x4b   : > { %s3688_s11 = scalar_lea.vmem (!%p3626_p11), [#allocation3], %s2649_s7  ;;  %p4211_p13 = scmp.ne.s32.totalorder (!%p3626_p11), %s4208_s29, 0 }
  0x4e   : > { %3480 = dma.done.wait (%p4211_p13), %s230_s10, 4096  }
  0x4f   : > { %3482 = vsyncadd (%p4211_p13), %s230_s10, 4294963200 }
  0x50   : > { %3484 = dma.done.wait (%p41_p5), [#allocation6], 16384  }
  0x51   : > { %3486 = vsyncadd (%p41_p5), [#allocation6], 4294950912  ;;  %v3107_v0 = vld [vmem:[#allocation5 + $0xe4] ss:$16 sps:$4 sm:$0xff]   ;;  %v3111_v2 = vld [vmem:[#allocation5 + $0xe0] ss:$16 sps:$4 sm:$0xff]  }
  0x52   : > { %v3109_v1 = vld [vmem:[#allocation5 + $0x2e4] ss:$16 sps:$4 sm:$0xff]   ;;  %1257 = vmatprep.subr.bf16.mxu0 %v3107_v0  ;;  %v3112_v3 = vld [vmem:[#allocation5 + $0x2e0] ss:$16 sps:$4 sm:$0xff]   ;;  %v3702_v51 = vld [vmem:[%s3688_s11 + $0xc] ss:$16 sps:$4 sm:$0xff]  }
  0x53   : > { %1370 = vmatprep.subr.bf16.mxu1 %v3109_v1  ;;  %v3113_v4 = vld [vmem:[#allocation5 + $0xc4] ss:$16 sps:$4 sm:$0xff]   ;;  %1258 = vmatpush1.bf16.msra.mxu0 %v3111_v2  ;;  %v3117_v6 = vld [vmem:[#allocation5 + $0xc0] ss:$16 sps:$4 sm:$0xff]   ;;  %v3211_v2 = vld [vmem:[#allocation5 + $0xec] ss:$16 sps:$4 sm:$0xff]  }
  0x54   : > { %1371 = vmatpush1.bf16.msra.mxu1 %v3112_v3  ;;  %v3115_v5 = vld [vmem:[#allocation5 + $0x2c4] ss:$16 sps:$4 sm:$0xff]   ;;  %1259 = vmatprep.subr.bf16.mxu0 %v3113_v4  ;;  %v3118_v7 = vld [vmem:[#allocation5 + $0x2c0] ss:$16 sps:$4 sm:$0xff]   ;;  %v3214_v3 = vld [vmem:[#allocation5 + $0x2ec] ss:$16 sps:$4 sm:$0xff]  }
  0x55   : > { %1372 = vmatprep.subr.bf16.mxu1 %v3115_v5  ;;  %v3119_v8 = vld [vmem:[#allocation5 + $0xa4] ss:$16 sps:$4 sm:$0xff]   ;;  %v3123_v10 = vld [vmem:[#allocation5 + $0xa0] ss:$16 sps:$4 sm:$0xff]   ;;  %1402 = vmatprep.mubr.bf16.mxu1 %v3702_v51  ;;  %v3710_v5 = vld [vmem:[%s3688_s11 + $0x8] ss:$16 sps:$4 sm:$0xff]  }
  0x56   : > { %v3121_v9 = vld [vmem:[#allocation5 + $0x2a4] ss:$16 sps:$4 sm:$0xff]   ;;  %v3124_v11 = vld [vmem:[#allocation5 + $0x2a0] ss:$16 sps:$4 sm:$0xff]   ;;  %s1933_s14 = sld [smem:[#allocation2]]  ;;  %s2651_s15 = sshll.u32 %s3684_s28, 7 }
  0x57   : > { %1260 = vmatpush1.bf16.msra.mxu0 %v3117_v6  ;;  %v3125_v12 = vld [vmem:[#allocation5 + $0x84] ss:$16 sps:$4 sm:$0xff]   ;;  %v3129_v14 = vld [vmem:[#allocation5 + $0x80] ss:$16 sps:$4 sm:$0xff]   ;;  %v3209_v6 = vld [vmem:[#allocation5 + $0xe8] ss:$16 sps:$4 sm:$0xff]  }
  0x58   : > { %1373 = vmatpush1.bf16.msra.mxu1 %v3118_v7  ;;  %1261 = vmatprep.subr.bf16.mxu0 %v3119_v8  ;;  %v3127_v13 = vld [vmem:[#allocation5 + $0x284] ss:$16 sps:$4 sm:$0xff]   ;;  %v3130_v15 = vld [vmem:[#allocation5 + $0x280] ss:$16 sps:$4 sm:$0xff]   ;;  %v3212_v7 = vld [vmem:[#allocation5 + $0x2e8] ss:$16 sps:$4 sm:$0xff]  }
  0x59   : > { %1374 = vmatprep.subr.bf16.mxu1 %v3121_v9  ;;  %v3131_v16 = vld [vmem:[#allocation5 + $0x64] ss:$16 sps:$4 sm:$0xff]   ;;  %v3135_v18 = vld [vmem:[#allocation5 + $0x60] ss:$16 sps:$4 sm:$0xff]   ;;  %v3217_v8 = vld [vmem:[#allocation5 + $0xcc] ss:$16 sps:$4 sm:$0xff]  }
  0x5a   : > { %v3133_v17 = vld [vmem:[#allocation5 + $0x264] ss:$16 sps:$4 sm:$0xff]   ;;  %v3136_v19 = vld [vmem:[#allocation5 + $0x260] ss:$16 sps:$4 sm:$0xff]   ;;  %v3220_v9 = vld [vmem:[#allocation5 + $0x2cc] ss:$16 sps:$4 sm:$0xff]  }
  0x5b   : > { %1262 = vmatpush1.bf16.msra.mxu0 %v3123_v10  ;;  %v3137_v20 = vld [vmem:[#allocation5 + $0x44] ss:$16 sps:$4 sm:$0xff]   ;;  %v3141_v22 = vld [vmem:[#allocation5 + $0x40] ss:$16 sps:$4 sm:$0xff]   ;;  %vm2321_vm0 = vcmask 7168   ;;  %s4048_s16 = scalar_lea.vmem [#allocation7], %s2651_s15  }
  0x5c   : > { %1375 = vmatpush1.bf16.msra.mxu1 %v3124_v11  ;;  %1263 = vmatprep.subr.bf16.mxu0 %v3125_v12  ;;  %v3139_v21 = vld [vmem:[#allocation5 + $0x244] ss:$16 sps:$4 sm:$0xff]   ;;  %v3142_v23 = vld [vmem:[#allocation5 + $0x240] ss:$16 sps:$4 sm:$0xff]   ;;  %v3716_v11 = vld [vmem:[%s3688_s11 + $0x2c] ss:$16 sps:$4 sm:$0xff]  }
  0x5d   : > { %1376 = vmatprep.subr.bf16.mxu1 %v3127_v13  ;;  %v3143_v24 = vld [vmem:[#allocation5 + $0x24] ss:$16 sps:$4 sm:$0xff]   ;;  %v3147_v26 = vld [vmem:[#allocation5 + $0x20] ss:$16 sps:$4 sm:$0xff]   ;;  %v3215_v12 = vld [vmem:[#allocation5 + $0xc8] ss:$16 sps:$4 sm:$0xff]  }
  0x5e   : > { %v3145_v25 = vld [vmem:[#allocation5 + $0x224] ss:$16 sps:$4 sm:$0xff]   ;;  %v3148_v27 = vld [vmem:[#allocation5 + $0x220] ss:$16 sps:$4 sm:$0xff]   ;;  %v3218_v13 = vld [vmem:[#allocation5 + $0x2c8] ss:$16 sps:$4 sm:$0xff]  }
  0x5f   : > { %1264 = vmatpush1.bf16.msra.mxu0 %v3129_v14  ;;  %v3149_v28 = vld [vmem:[#allocation5 + $0x4] ss:$16 sps:$4 sm:$0xff]   ;;  %v3153_v30 = vld [vmem:[#allocation5] ss:$16 sps:$4 sm:$0xff]   ;;  %v3229_v14 = vld [vmem:[#allocation5 + $0xac] ss:$16 sps:$4 sm:$0xff]  }
  0x60   : > { %1377 = vmatpush1.bf16.msra.mxu1 %v3130_v15  ;;  %1265 = vmatprep.subr.bf16.mxu0 %v3131_v16  ;;  %v3151_v29 = vld [vmem:[#allocation5 + $0x204] ss:$16 sps:$4 sm:$0xff]   ;;  %v3154_v31 = vld [vmem:[#allocation5 + $0x200] ss:$16 sps:$4 sm:$0xff]   ;;  %v3232_v15 = vld [vmem:[#allocation5 + $0x2ac] ss:$16 sps:$4 sm:$0xff]  }
  0x61   : > { %1378 = vmatprep.subr.bf16.mxu1 %v3133_v17  ;;  %v3155_v32 = vld [vmem:[#allocation5 + $0x1e4] ss:$16 sps:$4 sm:$0xff]   ;;  %v3159_v34 = vld [vmem:[#allocation5 + $0x1e0] ss:$16 sps:$4 sm:$0xff]   ;;  %v3726_v17 = vld [vmem:[%s3688_s11 + $0x28] ss:$16 sps:$4 sm:$0xff]  }
  0x62   : > { %v3157_v33 = vld [vmem:[#allocation5 + $0x3e4] ss:$16 sps:$4 sm:$0xff]   ;;  %v3160_v35 = vld [vmem:[#allocation5 + $0x3e0] ss:$16 sps:$4 sm:$0xff]   ;;  %p4212_p5 = scmp.ne.s32.totalorder %s4209_s30, 0 }
  0x63   : > { %1266 = vmatpush1.bf16.msra.mxu0 %v3135_v18  ;;  %v3161_v36 = vld [vmem:[#allocation5 + $0x1c4] ss:$16 sps:$4 sm:$0xff]   ;;  %v3165_v38 = vld [vmem:[#allocation5 + $0x1c0] ss:$16 sps:$4 sm:$0xff]   ;;  %v3227_v18 = vld [vmem:[#allocation5 + $0xa8] ss:$16 sps:$4 sm:$0xff]  }
  0x64   : > { %1379 = vmatpush1.bf16.msra.mxu1 %v3136_v19  ;;  %1267 = vmatprep.subr.bf16.mxu0 %v3137_v20  ;;  %v3163_v37 = vld [vmem:[#allocation5 + $0x3c4] ss:$16 sps:$4 sm:$0xff]   ;;  %v3166_v39 = vld [vmem:[#allocation5 + $0x3c0] ss:$16 sps:$4 sm:$0xff]   ;;  %v3230_v19 = vld [vmem:[#allocation5 + $0x2a8] ss:$16 sps:$4 sm:$0xff]  }
  0x65   : > { %1380 = vmatprep.subr.bf16.mxu1 %v3139_v21  ;;  %v3167_v40 = vld [vmem:[#allocation5 + $0x1a4] ss:$16 sps:$4 sm:$0xff]   ;;  %v3171_v42 = vld [vmem:[#allocation5 + $0x1a0] ss:$16 sps:$4 sm:$0xff]   ;;  %v3235_v20 = vld [vmem:[#allocation5 + $0x8c] ss:$16 sps:$4 sm:$0xff]  }
  0x66   : > { %v3169_v41 = vld [vmem:[#allocation5 + $0x3a4] ss:$16 sps:$4 sm:$0xff]   ;;  %v3172_v43 = vld [vmem:[#allocation5 + $0x3a0] ss:$16 sps:$4 sm:$0xff]   ;;  %v3238_v21 = vld [vmem:[#allocation5 + $0x28c] ss:$16 sps:$4 sm:$0xff]  }
  0x67   : > { %1268 = vmatpush1.bf16.msra.mxu0 %v3141_v22  ;;  %v3173_v44 = vld [vmem:[#allocation5 + $0x184] ss:$16 sps:$4 sm:$0xff]   ;;  %v3177_v46 = vld [vmem:[#allocation5 + $0x180] ss:$16 sps:$4 sm:$0xff]   ;;  %s2845_s28 = sshll.u32 (%p4212_p5), %s3593_s4, 4  ;;  %s2864_s17 = sshll.u32 (%p4212_p5), %s3593_s4, 7 }
  0x68   : > { %1381 = vmatpush1.bf16.msra.mxu1 %v3142_v23  ;;  %1269 = vmatprep.subr.bf16.mxu0 %v3143_v24  ;;  %v3175_v45 = vld [vmem:[#allocation5 + $0x384] ss:$16 sps:$4 sm:$0xff]   ;;  %v3178_v47 = vld [vmem:[#allocation5 + $0x380] ss:$16 sps:$4 sm:$0xff]   ;;  %v3732_v23 = vld [vmem:[%s3688_s11 + $0x4c] ss:$16 sps:$4 sm:$0xff]   ;;  %s4104_s7 = scalar_lea.vmem (%p4212_p5), %s4205_s5, %s2864_s17  }
  0x69   : > { %1382 = vmatprep.subr.bf16.mxu1 %v3145_v25  ;;  %v3179_v48 = vld [vmem:[#allocation5 + $0x164] ss:$16 sps:$4 sm:$0xff]   ;;  %v3183_v52 = vld [vmem:[#allocation5 + $0x160] ss:$16 sps:$4 sm:$0xff]   ;;  %v3233_v24 = vld [vmem:[#allocation5 + $0x88] ss:$16 sps:$4 sm:$0xff]  }
  0x6a   : > { %v3699_v49 = vld [vmem:[%s3688_s11 + $0x4] ss:$16 sps:$4 sm:$0xff]   ;;  %v3184_v53 = vld [vmem:[#allocation5 + $0x360] ss:$16 sps:$4 sm:$0xff]   ;;  %v3236_v25 = vld [vmem:[#allocation5 + $0x288] ss:$16 sps:$4 sm:$0xff]  }
  0x6b   : > { %1270 = vmatpush1.bf16.msra.mxu0 %v3147_v26  ;;  %v3181_v50 = vld [vmem:[#allocation5 + $0x364] ss:$16 sps:$4 sm:$0xff]   ;;  %1289 = vmatprep.mubr.bf16.mxu0 %v3699_v49  ;;  %v3189_v56 = vld [vmem:[#allocation5 + $0x140] ss:$16 sps:$4 sm:$0xff]   ;;  %v3247_v26 = vld [vmem:[#allocation5 + $0x6c] ss:$16 sps:$4 sm:$0xff]  }
  0x6c   : > { %1383 = vmatpush1.bf16.msra.mxu1 %v3148_v27  ;;  %1271 = vmatprep.subr.bf16.mxu0 %v3149_v28  ;;  %v3185_v54 = vld [vmem:[#allocation5 + $0x144] ss:$16 sps:$4 sm:$0xff]   ;;  %v3190_v57 = vld [vmem:[#allocation5 + $0x340] ss:$16 sps:$4 sm:$0xff]   ;;  %v3250_v27 = vld [vmem:[#allocation5 + $0x26c] ss:$16 sps:$4 sm:$0xff]  }
  0x6d   : > { %1384 = vmatprep.subr.bf16.mxu1 %v3151_v29  ;;  %v3187_v55 = vld [vmem:[#allocation5 + $0x344] ss:$16 sps:$4 sm:$0xff]   ;;  %v3195_v60 = vld [vmem:[#allocation5 + $0x120] ss:$16 sps:$4 sm:$0xff]   ;;  %v3742_v29 = vld [vmem:[%s3688_s11 + $0x48] ss:$16 sps:$4 sm:$0xff]  }
  0x6e   : > { %v3191_v58 = vld [vmem:[#allocation5 + $0x124] ss:$16 sps:$4 sm:$0xff]   ;;  %v3196_v61 = vld [vmem:[#allocation5 + $0x320] ss:$16 sps:$4 sm:$0xff]   ;;  %s2346_s19 = ssub.s32 (%p4212_p5), 38, %s2845_s28 }
  0x6f   : > { %1272 = vmatpush1.bf16.msra.mxu0 %v3153_v30  ;;  %v3193_v59 = vld [vmem:[#allocation5 + $0x324] ss:$16 sps:$4 sm:$0xff]   ;;  %v3201_v0 = vld [vmem:[#allocation5 + $0x100] ss:$16 sps:$4 sm:$0xff]   ;;  %v3245_v30 = vld [vmem:[#allocation5 + $0x68] ss:$16 sps:$4 sm:$0xff]  }
  0x70   : > { %1385 = vmatpush1.bf16.msra.mxu1 %v3154_v31  ;;  %1273 = vmatprep.subr.bf16.mxu0 %v3155_v32  ;;  %v3197_v62 = vld [vmem:[#allocation5 + $0x104] ss:$16 sps:$4 sm:$0xff]   ;;  %v3202_v1 = vld [vmem:[#allocation5 + $0x300] ss:$16 sps:$4 sm:$0xff]   ;;  %v3248_v31 = vld [vmem:[#allocation5 + $0x268] ss:$16 sps:$4 sm:$0xff]  }
  0x71   : > { %1386 = vmatprep.subr.bf16.mxu1 %v3157_v33  ;;  %v3199_v63 = vld [vmem:[#allocation5 + $0x304] ss:$16 sps:$4 sm:$0xff]   ;;  %v3707_v4 = vld [vmem:[%s3688_s11] ss:$16 sps:$4 sm:$0xff]   ;;  %v3253_v32 = vld [vmem:[#allocation5 + $0x4c] ss:$16 sps:$4 sm:$0xff]  }
  0x72   : > { %v3713_v10 = vld [vmem:[%s3688_s11 + $0x24] ss:$16 sps:$4 sm:$0xff]   ;;  %v3723_v16 = vld [vmem:[%s3688_s11 + $0x20] ss:$16 sps:$4 sm:$0xff]   ;;  %v3256_v33 = vld [vmem:[#allocation5 + $0x24c] ss:$16 sps:$4 sm:$0xff]  }
  0x73   : > { %1274 = vmatpush2.bf16.msra.mxu0 %v3159_v34  ;;  %v3729_v22 = vld [vmem:[%s3688_s11 + $0x44] ss:$16 sps:$4 sm:$0xff]   ;;  %v3739_v28 = vld [vmem:[%s3688_s11 + $0x40] ss:$16 sps:$4 sm:$0xff]   ;;  %p2347_p11 = scmp.lt.s32.totalorder (%p4212_p5), %s2346_s19, 16 }
  0x74   : > { %1387 = vmatpush2.bf16.msra.mxu1 %v3160_v35  ;;  %1275 = vmatprep.subr.bf16.mxu0 %v3161_v36  ;;  %v3745_v34 = vld [vmem:[%s3688_s11 + $0x64] ss:$16 sps:$4 sm:$0xff]   ;;  %v3748_v35 = vld [vmem:[%s3688_s11 + $0x6c] ss:$16 sps:$4 sm:$0xff]   ;;  %v3251_v36 = vld [vmem:[#allocation5 + $0x48] ss:$16 sps:$4 sm:$0xff]  }
  0x75   : > { %1388 = vmatprep.subr.bf16.mxu1 %v3163_v37  ;;  %v3254_v37 = vld [vmem:[#allocation5 + $0x248] ss:$16 sps:$4 sm:$0xff]  }
  0x77   : > { %1276 = vmatpush2.bf16.msra.mxu0 %v3165_v38  ;;  %v3265_v38 = vld [vmem:[#allocation5 + $0x2c] ss:$16 sps:$4 sm:$0xff]  }
  0x78   : > { %1389 = vmatpush2.bf16.msra.mxu1 %v3166_v39  ;;  %1277 = vmatprep.subr.bf16.mxu0 %v3167_v40  ;;  %v3268_v39 = vld [vmem:[#allocation5 + $0x22c] ss:$16 sps:$4 sm:$0xff]   ;;  %v3755_v40 = vld [vmem:[%s3688_s11 + $0x60] ss:$16 sps:$4 sm:$0xff]  }
  0x79   : > { %1390 = vmatprep.subr.bf16.mxu1 %v3169_v41  ;;  %v3758_v41 = vld [vmem:[%s3688_s11 + $0x68] ss:$16 sps:$4 sm:$0xff]  }
  0x7b   : > { %1278 = vmatpush2.bf16.msra.mxu0 %v3171_v42  ;;  %v3263_v42 = vld [vmem:[#allocation5 + $0x28] ss:$16 sps:$4 sm:$0xff]  }
  0x7c   : > { %1391 = vmatpush2.bf16.msra.mxu1 %v3172_v43  ;;  %1279 = vmatprep.subr.bf16.mxu0 %v3173_v44  ;;  %v3266_v43 = vld [vmem:[#allocation5 + $0x228] ss:$16 sps:$4 sm:$0xff]   ;;  %v3271_v44 = vld [vmem:[#allocation5 + $0xc] ss:$16 sps:$4 sm:$0xff]  }
  0x7d   : > { %1392 = vmatprep.subr.bf16.mxu1 %v3175_v45  ;;  %v3274_v45 = vld [vmem:[#allocation5 + $0x20c] ss:$16 sps:$4 sm:$0xff]  }
  0x7f   : > { %1280 = vmatpush2.bf16.msra.mxu0 %v3177_v46  ;;  %v3761_v46 = vld [vmem:[%s3688_s11 + $0x84] ss:$16 sps:$4 sm:$0xff]  }
  0x80   : > { %1393 = vmatpush2.bf16.msra.mxu1 %v3178_v47  ;;  %1281 = vmatprep.subr.bf16.mxu0 %v3179_v48  ;;  %v3764_v47 = vld [vmem:[%s3688_s11 + $0x8c] ss:$16 sps:$4 sm:$0xff]   ;;  %v3269_v48 = vld [vmem:[#allocation5 + $0x8] ss:$16 sps:$4 sm:$0xff]  }
  0x81   : > { %1394 = vmatprep.subr.bf16.mxu1 %v3181_v50  ;;  %v3272_v50 = vld [vmem:[#allocation5 + $0x208] ss:$16 sps:$4 sm:$0xff]  }
  0x83   : > { %1282 = vmatpush2.bf16.msra.mxu0 %v3183_v52  ;;  %v3283_v52 = vld [vmem:[#allocation5 + $0x1ec] ss:$16 sps:$4 sm:$0xff]  }
  0x84   : > { %1395 = vmatpush2.bf16.msra.mxu1 %v3184_v53  ;;  %1283 = vmatprep.subr.bf16.mxu0 %v3185_v54  ;;  %v3286_v53 = vld [vmem:[#allocation5 + $0x3ec] ss:$16 sps:$4 sm:$0xff]   ;;  %v3771_v54 = vld [vmem:[%s3688_s11 + $0x80] ss:$16 sps:$4 sm:$0xff]  }
  0x85   : > { %1396 = vmatprep.subr.bf16.mxu1 %v3187_v55  ;;  %v3774_v55 = vld [vmem:[%s3688_s11 + $0x88] ss:$16 sps:$4 sm:$0xff]  }
  0x87   : > { %1284 = vmatpush2.bf16.msra.mxu0 %v3189_v56  ;;  %v3281_v56 = vld [vmem:[#allocation5 + $0x1e8] ss:$16 sps:$4 sm:$0xff]  }
  0x88   : > { %1397 = vmatpush2.bf16.msra.mxu1 %v3190_v57  ;;  %1285 = vmatprep.subr.bf16.mxu0 %v3191_v58  ;;  %v3284_v57 = vld [vmem:[#allocation5 + $0x3e8] ss:$16 sps:$4 sm:$0xff]   ;;  %v3289_v58 = vld [vmem:[#allocation5 + $0x1cc] ss:$16 sps:$4 sm:$0xff]  }
  0x89   : > { %1398 = vmatprep.subr.bf16.mxu1 %v3193_v59  ;;  %v3292_v59 = vld [vmem:[#allocation5 + $0x3cc] ss:$16 sps:$4 sm:$0xff]  }
  0x8b   : > { %1286 = vmatpush2.bf16.msra.mxu0 %v3195_v60  ;;  %v3777_v60 = vld [vmem:[%s3688_s11 + $0xa4] ss:$16 sps:$4 sm:$0xff]  }
  0x8c   : > { %1399 = vmatpush2.bf16.msra.mxu1 %v3196_v61  ;;  %1287 = vmatprep.subr.bf16.mxu0 %v3197_v62  ;;  %v3780_v61 = vld [vmem:[%s3688_s11 + $0xac] ss:$16 sps:$4 sm:$0xff]   ;;  %v3287_v62 = vld [vmem:[#allocation5 + $0x1c8] ss:$16 sps:$4 sm:$0xff]  }
  0x8d   : > { %1400 = vmatprep.subr.bf16.mxu1 %v3199_v63  ;;  %v3290_v63 = vld [vmem:[#allocation5 + $0x3c8] ss:$16 sps:$4 sm:$0xff]  }
  0x8f   : > { %1288 = vmatpush2.bf16.msra.mxu0 %v3201_v0  ;;  %v3301_v0 = vld [vmem:[#allocation5 + $0x1ac] ss:$16 sps:$4 sm:$0xff]  }
  0x90   : > { %1401 = vmatpush2.bf16.msra.mxu1 %v3202_v1  ;;  %1483 = vmatprep.subr.bf16.mxu0 %v3211_v2  ;;  %v3304_v1 = vld [vmem:[#allocation5 + $0x3ac] ss:$16 sps:$4 sm:$0xff]   ;;  %v3787_v2 = vld [vmem:[%s3688_s11 + $0xa0] ss:$16 sps:$4 sm:$0xff]  }
  0x91   : > { %1596 = vmatprep.subr.bf16.mxu1 %v3214_v3  ;;  %v3790_v3 = vld [vmem:[%s3688_s11 + $0xa8] ss:$16 sps:$4 sm:$0xff]  }
  0x92   : > { %1290 = vmatmul.mubr.bf16.vlgmr.msra.gmra.mxu0 %v3707_v4 }
  0x93   : > { %1403 = vmatmul.mubr.bf16.vlgmr.msra.gmra.mxu1 %v3710_v5  ;;  %1484 = vmatpush1.bf16.msra.mxu0 %v3209_v6  ;;  %v3299_v6 = vld [vmem:[#allocation5 + $0x1a8] ss:$16 sps:$4 sm:$0xff]  }
  0x94   : > { %1597 = vmatpush1.bf16.msra.mxu1 %v3212_v7  ;;  %1485 = vmatprep.subr.bf16.mxu0 %v3217_v8  ;;  %v3302_v7 = vld [vmem:[#allocation5 + $0x3a8] ss:$16 sps:$4 sm:$0xff]   ;;  %v3307_v8 = vld [vmem:[#allocation5 + $0x18c] ss:$16 sps:$4 sm:$0xff]  }
  0x95   : > { %1598 = vmatprep.subr.bf16.mxu1 %v3220_v9  ;;  %1299 = vmatprep.mubr.bf16.mxu0 %v3713_v10  ;;  %v3310_v9 = vld [vmem:[#allocation5 + $0x38c] ss:$16 sps:$4 sm:$0xff]  }
  0x96   : > { %1412 = vmatprep.mubr.bf16.mxu1 %v3716_v11 }
  0x97   : > { %1486 = vmatpush1.bf16.msra.mxu0 %v3215_v12  ;;  %v3305_v12 = vld [vmem:[#allocation5 + $0x188] ss:$16 sps:$4 sm:$0xff]  }
  0x98   : > { %1599 = vmatpush1.bf16.msra.mxu1 %v3218_v13  ;;  %1487 = vmatprep.subr.bf16.mxu0 %v3229_v14  ;;  %v3793_v13 = vld [vmem:[%s3688_s11 + $0xc4] ss:$16 sps:$4 sm:$0xff]   ;;  %v3796_v14 = vld [vmem:[%s3688_s11 + $0xcc] ss:$16 sps:$4 sm:$0xff]  }
  0x99   : > { %1600 = vmatprep.subr.bf16.mxu1 %v3232_v15  ;;  %v3308_v15 = vld [vmem:[#allocation5 + $0x388] ss:$16 sps:$4 sm:$0xff]  }
  0x9a   : > { %1300 = vmatmul.mubr.bf16.gmra.mxu0 %v3723_v16 }
  0x9b   : > { %1413 = vmatmul.mubr.bf16.gmra.mxu1 %v3726_v17  ;;  %1488 = vmatpush1.bf16.msra.mxu0 %v3227_v18  ;;  %v3319_v18 = vld [vmem:[#allocation5 + $0x16c] ss:$16 sps:$4 sm:$0xff]  }
  0x9c   : > { %1601 = vmatpush1.bf16.msra.mxu1 %v3230_v19  ;;  %1489 = vmatprep.subr.bf16.mxu0 %v3235_v20  ;;  %v3801_v19 = vld [vmem:[%s3688_s11 + $0xc0] ss:$16 sps:$4 sm:$0xff]   ;;  %v3804_v20 = vld [vmem:[%s3688_s11 + $0xc8] ss:$16 sps:$4 sm:$0xff]  }
  0x9d   : > { %1602 = vmatprep.subr.bf16.mxu1 %v3238_v21  ;;  %1309 = vmatprep.mubr.bf16.mxu0 %v3729_v22  ;;  %v3322_v21 = vld [vmem:[#allocation5 + $0x36c] ss:$16 sps:$4 sm:$0xff]  }
  0x9e   : > { %1422 = vmatprep.mubr.bf16.mxu1 %v3732_v23 }
  0x9f   : > { %1490 = vmatpush1.bf16.msra.mxu0 %v3233_v24  ;;  %v3317_v24 = vld [vmem:[#allocation5 + $0x168] ss:$16 sps:$4 sm:$0xff]  }
  0xa0   : > { %1603 = vmatpush1.bf16.msra.mxu1 %v3236_v25  ;;  %1491 = vmatprep.subr.bf16.mxu0 %v3247_v26  ;;  %v3320_v25 = vld [vmem:[#allocation5 + $0x368] ss:$16 sps:$4 sm:$0xff]   ;;  %v3325_v26 = vld [vmem:[#allocation5 + $0x14c] ss:$16 sps:$4 sm:$0xff]  }
  0xa1   : > { %1604 = vmatprep.subr.bf16.mxu1 %v3250_v27  ;;  %v3328_v27 = vld [vmem:[#allocation5 + $0x34c] ss:$16 sps:$4 sm:$0xff]  }
  0xa2   : > { %1310 = vmatmul.mubr.bf16.gmra.mxu0 %v3739_v28 }
  0xa3   : > { %1423 = vmatmul.mubr.bf16.gmra.mxu1 %v3742_v29  ;;  %1492 = vmatpush1.bf16.msra.mxu0 %v3245_v30  ;;  %v3323_v30 = vld [vmem:[#allocation5 + $0x148] ss:$16 sps:$4 sm:$0xff]  }
  0xa4   : > { %1605 = vmatpush1.bf16.msra.mxu1 %v3248_v31  ;;  %1493 = vmatprep.subr.bf16.mxu0 %v3253_v32  ;;  %v3326_v31 = vld [vmem:[#allocation5 + $0x348] ss:$16 sps:$4 sm:$0xff]   ;;  %v3809_v32 = vld [vmem:[%s3688_s11 + $0xe4] ss:$16 sps:$4 sm:$0xff]  }
  0xa5   : > { %1606 = vmatprep.subr.bf16.mxu1 %v3256_v33  ;;  %1319 = vmatprep.mubr.bf16.mxu0 %v3745_v34  ;;  %v3812_v33 = vld [vmem:[%s3688_s11 + $0xec] ss:$16 sps:$4 sm:$0xff]  }
  0xa6   : > { %1432 = vmatprep.mubr.bf16.mxu1 %v3748_v35 }
  0xa7   : > { %1494 = vmatpush1.bf16.msra.mxu0 %v3251_v36  ;;  %v3337_v36 = vld [vmem:[#allocation5 + $0x12c] ss:$16 sps:$4 sm:$0xff]  }
  0xa8   : > { %1607 = vmatpush1.bf16.msra.mxu1 %v3254_v37  ;;  %1495 = vmatprep.subr.bf16.mxu0 %v3265_v38  ;;  %v3340_v37 = vld [vmem:[#allocation5 + $0x32c] ss:$16 sps:$4 sm:$0xff]   ;;  %v3817_v38 = vld [vmem:[%s3688_s11 + $0xe0] ss:$16 sps:$4 sm:$0xff]  }
  0xa9   : > { %1608 = vmatprep.subr.bf16.mxu1 %v3268_v39  ;;  %v3820_v39 = vld [vmem:[%s3688_s11 + $0xe8] ss:$16 sps:$4 sm:$0xff]  }
  0xaa   : > { %1320 = vmatmul.mubr.bf16.gmra.mxu0 %v3755_v40 }
  0xab   : > { %1433 = vmatmul.mubr.bf16.gmra.mxu1 %v3758_v41  ;;  %1496 = vmatpush1.bf16.msra.mxu0 %v3263_v42  ;;  %v3335_v42 = vld [vmem:[#allocation5 + $0x128] ss:$16 sps:$4 sm:$0xff]  }
  0xac   : > { %1609 = vmatpush1.bf16.msra.mxu1 %v3266_v43  ;;  %1497 = vmatprep.subr.bf16.mxu0 %v3271_v44  ;;  %v3338_v43 = vld [vmem:[#allocation5 + $0x328] ss:$16 sps:$4 sm:$0xff]   ;;  %v3343_v44 = vld [vmem:[#allocation5 + $0x10c] ss:$16 sps:$4 sm:$0xff]  }
  0xad   : > { %1610 = vmatprep.subr.bf16.mxu1 %v3274_v45  ;;  %1329 = vmatprep.mubr.bf16.mxu0 %v3761_v46  ;;  %v3346_v45 = vld [vmem:[#allocation5 + $0x30c] ss:$16 sps:$4 sm:$0xff]  }
  0xae   : > { %1442 = vmatprep.mubr.bf16.mxu1 %v3764_v47 }
  0xaf   : > { %1498 = vmatpush1.bf16.msra.mxu0 %v3269_v48  ;;  %v3341_v48 = vld [vmem:[#allocation5 + $0x108] ss:$16 sps:$4 sm:$0xff]  }
  0xb0   : > { %1611 = vmatpush1.bf16.msra.mxu1 %v3272_v50  ;;  %1499 = vmatprep.subr.bf16.mxu0 %v3283_v52  ;;  %v3344_v50 = vld [vmem:[#allocation5 + $0x308] ss:$16 sps:$4 sm:$0xff]  }
  0xb1   : > { %1612 = vmatprep.subr.bf16.mxu1 %v3286_v53  ;;  %v3347_v52 = vld [vmem:[%s4203_s3 + $0x78] sm:$0xff]  }
  0xb2   : > { %1330 = vmatmul.mubr.bf16.gmra.mxu0 %v3771_v54  ;;  %v3348_v53 = vld [vmem:[%s4203_s3 + $0x38] sm:$0xff]  }
  0xb3   : > { %1443 = vmatmul.mubr.bf16.gmra.mxu1 %v3774_v55  ;;  %1500 = vmatpush2.bf16.msra.mxu0 %v3281_v56  ;;  %v3349_v56 = vld [vmem:[%s4203_s3 + $0x70] sm:$0xff]  }
  0xb4   : > { %1613 = vmatpush2.bf16.msra.mxu1 %v3284_v57  ;;  %1501 = vmatprep.subr.bf16.mxu0 %v3289_v58  ;;  %v3362_v57 = vld [vmem:[%s4203_s3] sm:$0xff]   ;;  %v3371_v58 = vld [vmem:[%s4203_s3 + $0xd8] sm:$0xff]  }
  0xb5   : > { %1614 = vmatprep.subr.bf16.mxu1 %v3292_v59  ;;  %1339 = vmatprep.mubr.bf16.mxu0 %v3777_v60  ;;  %v3372_v59 = vld [vmem:[%s4203_s3 + $0x98] sm:$0xff]  }
  0xb6   : > { %1452 = vmatprep.mubr.bf16.mxu1 %v3780_v61 }
  0xb7   : > { %1502 = vmatpush2.bf16.msra.mxu0 %v3287_v62  ;;  %v3375_v62 = vld [vmem:[%s4203_s3 + $0xc8] sm:$0xff]  }
  0xb8   : > { %1615 = vmatpush2.bf16.msra.mxu1 %v3290_v63  ;;  %1503 = vmatprep.subr.bf16.mxu0 %v3301_v0  ;;  %v3376_v63 = vld [vmem:[%s4203_s3 + $0x88] sm:$0xff]   ;;  %v3377_v0 = vld [vmem:[%s4203_s3 + $0xc0] sm:$0xff]  }
  0xb9   : > { %1616 = vmatprep.subr.bf16.mxu1 %v3304_v1  ;;  %v3378_v1 = vld [vmem:[%s4203_s3 + $0x80] sm:$0xff]  }
  0xba   : > { %1340 = vmatmul.mubr.bf16.gmra.mxu0 %v3787_v2 }
  0xbb   : > { %1453 = vmatmul.mubr.bf16.gmra.mxu1 %v3790_v3  ;;  %1504 = vmatpush2.bf16.msra.mxu0 %v3299_v6 }
  0xbc   : > { %1617 = vmatpush2.bf16.msra.mxu1 %v3302_v7  ;;  %1505 = vmatprep.subr.bf16.mxu0 %v3307_v8  ;;  %v3960_v7 = vld [vmem:[%s4202_s2] sm:$0xf] }
  0xbd   : > { %1618 = vmatprep.subr.bf16.mxu1 %v3310_v9  ;;  %1349 = vmatprep.mubr.bf16.mxu0 %v3793_v13 }
  0xbe   : > { %1462 = vmatprep.mubr.bf16.mxu1 %v3796_v14 }
  0xbf   : > { %1506 = vmatpush2.bf16.msra.mxu0 %v3305_v12 }
  0xc0   : > { %1619 = vmatpush2.bf16.msra.mxu1 %v3308_v15  ;;  %1507 = vmatprep.subr.bf16.mxu0 %v3319_v18 }
  0xc1   : > { %1620 = vmatprep.subr.bf16.mxu1 %v3322_v21 }
  0xc2   : > { %1350 = vmatmul.mubr.bf16.gmra.mxu0 %v3801_v19 }
  0xc3   : > { %1463 = vmatmul.mubr.bf16.gmra.mxu1 %v3804_v20  ;;  %1508 = vmatpush2.bf16.msra.mxu0 %v3317_v24 }
  0xc4   : > { %1621 = vmatpush2.bf16.msra.mxu1 %v3320_v25  ;;  %1509 = vmatprep.subr.bf16.mxu0 %v3325_v26 }
  0xc5   : > { %1622 = vmatprep.subr.bf16.mxu1 %v3328_v27  ;;  %1359 = vmatprep.mubr.bf16.mxu0 %v3809_v32 }
  0xc6   : > { %1472 = vmatprep.mubr.bf16.mxu1 %v3812_v33 }
  0xc7   : > { %1510 = vmatpush2.bf16.msra.mxu0 %v3323_v30 }
  0xc8   : > { %1623 = vmatpush2.bf16.msra.mxu1 %v3326_v31  ;;  %1511 = vmatprep.subr.bf16.mxu0 %v3337_v36 }
  0xc9   : > { %1624 = vmatprep.subr.bf16.mxu1 %v3340_v37 }
  0xca   : > { %1360 = vmatmul.mubr.bf16.gmra.mxu0 %v3817_v38 }
  0xcb   : > { %1473 = vmatmul.mubr.bf16.gmra.mxu1 %v3820_v39  ;;  %1512 = vmatpush2.bf16.msra.mxu0 %v3335_v42 }
  0xcc   : > { %1625 = vmatpush2.bf16.msra.mxu1 %v3338_v43  ;;  %1513 = vmatprep.subr.bf16.mxu0 %v3343_v44 }
  0xcd   : > { %1626 = vmatprep.subr.bf16.mxu1 %v3346_v45  ;;  %1515 = vmatprep.mubr.bf16.mxu0 %v3699_v49  ;;  %v3350_v49 = vld [vmem:[%s4203_s3 + $0x30] sm:$0xff]  }
  0xce   : > { %1628 = vmatprep.mubr.bf16.mxu1 %v3702_v51  ;;  %v3351_v51 = vld [vmem:[%s4203_s3 + $0x68] sm:$0xff]  }
  0xcf   : > { %1514 = vmatpush2.bf16.msra.mxu0 %v3341_v48 }
  0xd0   : > { %1627 = vmatpush2.bf16.msra.mxu1 %v3344_v50  ;;  %2867 = vmatprep.subr.bf16.mxu0 %v3347_v52 }
  0xd2   : > { %1516 = vmatmul.mubr.bf16.vlgmr.msra.gmra.mxu0 %v3707_v4  ;;  %v3352_v4 = vld [vmem:[%s4203_s3 + $0x28] sm:$0xff]  }
  0xd3   : > { %1629 = vmatmul.mubr.bf16.vlgmr.msra.gmra.mxu1 %v3710_v5  ;;  %1525 = vmatprep.mubr.bf16.mxu0 %v3713_v10  ;;  %v3353_v5 = vld [vmem:[%s4203_s3 + $0x60] sm:$0xff]  }
  0xd4   : > { %1638 = vmatprep.mubr.bf16.mxu1 %v3716_v11  ;;  %2868 = vmatpush3.bf16.msra.mxu0 %v3348_v53  ;;  %v3354_v10 = vld [vmem:[%s4203_s3 + $0x20] sm:$0xff]   ;;  %v3355_v11 = vld [vmem:[%s4203_s3 + $0x58] sm:$0xff]  }
  0xd5   : > { %2869 = vmatprep.subr.bf16.mxu0 %v3349_v56 }
  0xd8   : > { %2870 = vmatpush3.bf16.msra.mxu0 %v3350_v49 }
  0xd9   : > { %2871 = vmatprep.subr.bf16.mxu0 %v3351_v51 }
  0xda   : > { %1526 = vmatmul.mubr.bf16.gmra.mxu0 %v3723_v16  ;;  %v3356_v16 = vld [vmem:[%s4203_s3 + $0x18] sm:$0xff]  }
  0xdb   : > { %1639 = vmatmul.mubr.bf16.gmra.mxu1 %v3726_v17  ;;  %1535 = vmatprep.mubr.bf16.mxu0 %v3729_v22  ;;  %v3357_v17 = vld [vmem:[%s4203_s3 + $0x50] sm:$0xff]  }
  0xdc   : > { %1648 = vmatprep.mubr.bf16.mxu1 %v3732_v23  ;;  %2872 = vmatpush3.bf16.msra.mxu0 %v3352_v4  ;;  %v3358_v22 = vld [vmem:[%s4203_s3 + $0x10] sm:$0xff]   ;;  %v3359_v23 = vld [vmem:[%s4203_s3 + $0x48] sm:$0xff]  }
  0xdd   : > { %2873 = vmatprep.subr.bf16.mxu0 %v3353_v5 }
  0xe0   : > { %2874 = vmatpush3.bf16.msra.mxu0 %v3354_v10 }
  0xe1   : > { %2875 = vmatprep.subr.bf16.mxu0 %v3355_v11 }
  0xe2   : > { %1536 = vmatmul.mubr.bf16.gmra.mxu0 %v3739_v28  ;;  %v3360_v28 = vld [vmem:[%s4203_s3 + $0x8] sm:$0xff]  }
  0xe3   : > { %1649 = vmatmul.mubr.bf16.gmra.mxu1 %v3742_v29  ;;  %1545 = vmatprep.mubr.bf16.mxu0 %v3745_v34  ;;  %v3361_v29 = vld [vmem:[%s4203_s3 + $0x40] sm:$0xff]   ;;  %v3363_v34 = vld [vmem:[%s4203_s3 + $0xf8] sm:$0xff]  }
  0xe4   : > { %1658 = vmatprep.mubr.bf16.mxu1 %v3748_v35  ;;  %2876 = vmatpush3.bf16.msra.mxu0 %v3356_v16  ;;  %v3364_v35 = vld [vmem:[%s4203_s3 + $0xb8] sm:$0xff]  }
  0xe5   : > { %2877 = vmatprep.subr.bf16.mxu0 %v3357_v17  ;;  %2931 = vmatprep.subr.bf16.mxu1 %v3363_v34 }
  0xe6   : > { %2932 = vmatpush3.bf16.msra.mxu1 %v3364_v35 }
  0xe8   : > { %2878 = vmatpush3.bf16.msra.mxu0 %v3358_v22 }
  0xe9   : > { %2879 = vmatprep.subr.bf16.mxu0 %v3359_v23 }
  0xea   : > { %1546 = vmatmul.mubr.bf16.gmra.mxu0 %v3755_v40  ;;  %v3365_v40 = vld [vmem:[%s4203_s3 + $0xf0] sm:$0xff]  }
  0xeb   : > { %1659 = vmatmul.mubr.bf16.gmra.mxu1 %v3758_v41  ;;  %1555 = vmatprep.mubr.bf16.mxu0 %v3761_v46  ;;  %v3366_v41 = vld [vmem:[%s4203_s3 + $0xb0] sm:$0xff]   ;;  %v3367_v46 = vld [vmem:[%s4203_s3 + $0xe8] sm:$0xff]  }
  0xec   : > { %1668 = vmatprep.mubr.bf16.mxu1 %v3764_v47  ;;  %2880 = vmatpush3.bf16.msra.mxu0 %v3360_v28  ;;  %v3368_v47 = vld [vmem:[%s4203_s3 + $0xa8] sm:$0xff]  }
  0xed   : > { %2881 = vmatprep.subr.bf16.mxu0 %v3361_v29  ;;  %2933 = vmatprep.subr.bf16.mxu1 %v3365_v40 }
  0xee   : > { %2934 = vmatpush3.bf16.msra.mxu1 %v3366_v41 }
  0xef   : > { %2935 = vmatprep.subr.bf16.mxu1 %v3367_v46 }
  0xf0   : > { %2882 = vmatpush3.bf16.msra.mxu0 %v3362_v57 }
  0xf2   : > { %1556 = vmatmul.mubr.bf16.gmra.mxu0 %v3771_v54  ;;  %2936 = vmatpush3.bf16.msra.mxu1 %v3368_v47  ;;  %v3369_v54 = vld [vmem:[%s4203_s3 + $0xe0] sm:$0xff]  }
  0xf3   : > { %1669 = vmatmul.mubr.bf16.gmra.mxu1 %v3774_v55  ;;  %1565 = vmatprep.mubr.bf16.mxu0 %v3777_v60  ;;  %v3370_v55 = vld [vmem:[%s4203_s3 + $0xa0] sm:$0xff]   ;;  %v3373_v60 = vld [vmem:[%s4203_s3 + $0xd0] sm:$0xff]  }
  0xf4   : > { %1678 = vmatprep.mubr.bf16.mxu1 %v3780_v61  ;;  %2937 = vmatprep.subr.bf16.mxu1 %v3369_v54  ;;  %v3374_v61 = vld [vmem:[%s4203_s3 + $0x90] sm:$0xff]  }
  0xf6   : > { %2938 = vmatpush3.bf16.msra.mxu1 %v3370_v55 }
  0xf7   : > { %2939 = vmatprep.subr.bf16.mxu1 %v3371_v58 }
  0xfa   : > { %1566 = vmatmul.mubr.bf16.gmra.mxu0 %v3787_v2  ;;  %2940 = vmatpush3.bf16.msra.mxu1 %v3372_v59  ;;  %v437_v2 = vlaneseq }
  0xfb   : > { %1679 = vmatmul.mubr.bf16.gmra.mxu1 %v3790_v3  ;;  %1575 = vmatprep.mubr.bf16.mxu0 %v3793_v13 }
  0xfc   : > { %1688 = vmatprep.mubr.bf16.mxu1 %v3796_v14  ;;  %2941 = vmatprep.subr.bf16.mxu1 %v3373_v60  ;;  %v3954_v3 = vshrl.u32 %v437_v2, 7 }
  0xfe   : > { %2942 = vmatpush3.bf16.msra.mxu1 %v3374_v61  ;;  %v439_v6 = vsub.s32 0, %v3954_v3  ;;  %v443_v8 = vsub.s32 1, %v3954_v3 }
  0xff   : > { %2943 = vmatprep.subr.bf16.mxu1 %v3375_v62 }
 0x100   : > { %v3964_v9 = vrot.slane %v3960_v7, %v439_v6  ;;  %v3967_v12 = vrot.slane %v3960_v7, %v443_v8 }
 0x102   : > { %1576 = vmatmul.mubr.bf16.gmra.mxu0 %v3801_v19  ;;  %2944 = vmatpush3.bf16.msra.mxu1 %v3376_v63 }
 0x103   : > { %1689 = vmatmul.mubr.bf16.gmra.mxu1 %v3804_v20  ;;  %1585 = vmatprep.mubr.bf16.mxu0 %v3809_v32 }
 0x104   : > { %1698 = vmatprep.mubr.bf16.mxu1 %v3812_v33  ;;  %2945 = vmatprep.subr.bf16.mxu1 %v3377_v0 }
 0x106   : > { %2946 = vmatpush3.bf16.msra.mxu1 %v3378_v1 }
 0x10a   : > { %1586 = vmatmul.mubr.bf16.gmra.mxu0 %v3817_v38 }
 0x10b   : > { %1699 = vmatmul.mubr.bf16.gmra.mxu1 %v3820_v39 }
 0x152   : > { %v1291_v13 = vpop.f32.mrf.mxu0 }
 0x153   : > { %v1404_v14 = vpop.f32.mrf.mxu1  ;;  %v1292_v15 = vadd.f32 %v1291_v13, %v3964_v9 }
 0x154   : > { %v1293_v18 = vpop.f32.mrf.mxu0 }
 0x155   : > { %v1406_v19 = vpop.f32.mrf.mxu1  ;;  %v1294_v20 = vadd.f32 %v1293_v18, %v3967_v12  ;;  %v1405_v27 = vadd.f32 %v1404_v14, %v1292_v15 }
 0x156   : > { %v1295_v21 = vpop.f32.mrf.mxu0 }
 0x157   : > { %v1408_v24 = vpop.f32.mrf.mxu1  ;;  %v1407_v25 = vadd.f32 %v1406_v19, %v1294_v20  ;;  %v1296_v26 = vadd.f32 %v1295_v21, %v3964_v9  ;;  %v1709_v43 = vmul.f32 0.2, %v1405_v27 }
 0x158   : > { %v1297_v30 = vpop.f32.mrf.mxu0 }
 0x159   : > { %v1410_v31 = vpop.f32.mrf.mxu1  ;;  %v1409_v32 = vadd.f32 %v1408_v24, %v1296_v26  ;;  %v1298_v33 = vadd.f32 %v1297_v30, %v3967_v12  ;;  %v1710_v38 = vmul.f32 0.2, %v1407_v25  ;;  %v1773_v5 = vmax.f32 %v1405_v27, %v1709_v43 }
 0x15a   : > { %v1301_v36 = vpop.f32.mrf.mxu0 }
 0x15b   : > { %v1414_v37 = vpop.f32.mrf.mxu1  ;;  %v1713_v39 = vmul.f32 0.2, %v1409_v32  ;;  %v1411_v42 = vadd.f32 %v1410_v31, %v1298_v33  ;;  %v1302_v50 = vadd.f32 %v1301_v36, %v3964_v9  ;;  %v1774_v51 = vmax.f32 %v1407_v25, %v1710_v38 }
 0x15c   : > { %v1303_v44 = vpop.f32.mrf.mxu0 }
 0x15d   : > { %v1416_v45 = vpop.f32.mrf.mxu1  ;;  %v1714_v48 = vmul.f32 0.2, %v1411_v42  ;;  %v1304_v52 = vadd.f32 %v1303_v44, %v3967_v12  ;;  %v1777_v53 = vmax.f32 %v1409_v32, %v1713_v39  ;;  %v1415_v22 = vadd.f32 %v1414_v37, %v1302_v50 }
 0x15e   : > { %v1305_v56 = vpop.f32.mrf.mxu0 }
 0x15f   : > { %v1418_v49 = vpop.f32.mrf.mxu1  ;;  %v1778_v4 = vmax.f32 %v1411_v42, %v1714_v48  ;;  %v1417_v10 = vadd.f32 %v1416_v45, %v1304_v52  ;;  %v1306_v11 = vadd.f32 %v1305_v56, %v3964_v9  ;;  %v1837_v29 = vpack.c.bf16 %v1777_v53, %v1773_v5 }
 0x160   : > { %v1307_v16 = vpop.f32.mrf.mxu0  ;;  %v1717_v55 = vmul.f32 0.2, %v1415_v22 }
 0x161   : > { %v1420_v17 = vpop.f32.mrf.mxu1  ;;  %v1308_v23 = vadd.f32 %v1307_v16, %v3967_v12  ;;  %v1838_v28 = vpack.c.bf16 %v1778_v4, %v1774_v51  ;;  %v1419_v34 = vadd.f32 %v1418_v49, %v1306_v11  ;;  %v1718_v41 = vmul.f32 0.2, %v1417_v10 }
 0x162   : > { %v1311_v35 = vpop.f32.mrf.mxu0  ;;  %v1781_v14 = vmax.f32 %v1415_v22, %v1717_v55 }
 0x163   : > { %v1424_v57 = vpop.f32.mrf.mxu1  ;;  %v1421_v40 = vadd.f32 %v1420_v17, %v1308_v23  ;;  %2159 = vmatprep.mubr.bf16.mxu0 %v1838_v28  ;;  %v1721_v46 = vmul.f32 0.2, %v1419_v34  ;;  %v1312_v59 = vadd.f32 %v1311_v35, %v3964_v9  ;;  %v1782_v2 = vmax.f32 %v1417_v10, %v1718_v41 }
 0x164   : > { %v1313_v47 = vpop.f32.mrf.mxu0  ;;  %2160 = vmatmul.mubr.bf16.vlgmr.msra.gmra.mxu0 %v1837_v29 }
 0x165   : > { %v1426_v54 = vpop.f32.mrf.mxu1  ;;  %v1722_v58 = vmul.f32 0.2, %v1421_v40  ;;  %v1314_v60 = vadd.f32 %v1313_v47, %v3967_v12  ;;  %v1785_v63 = vmax.f32 %v1419_v34, %v1721_v46  ;;  %v1425_v15 = vadd.f32 %v1424_v57, %v1312_v59 }
 0x166   : > { %v1315_v61 = vpop.f32.mrf.mxu0 }
 0x167   : > { %v1428_v62 = vpop.f32.mrf.mxu1  ;;  %v1786_v0 = vmax.f32 %v1421_v40, %v1722_v58  ;;  %v1316_v1 = vadd.f32 %v1315_v61, %v3964_v9  ;;  %v1427_v6 = vadd.f32 %v1426_v54, %v1314_v60  ;;  %v1841_v27 = vpack.c.bf16 %v1785_v63, %v1781_v14 }
 0x168   : > { %v1317_v8 = vpop.f32.mrf.mxu0  ;;  %v1725_v33 = vmul.f32 0.2, %v1425_v15 }
 0x169   : > { %v1430_v13 = vpop.f32.mrf.mxu1  ;;  %v1429_v18 = vadd.f32 %v1428_v62, %v1316_v1  ;;  %v1318_v19 = vadd.f32 %v1317_v8, %v3967_v12  ;;  %v1842_v24 = vpack.c.bf16 %v1786_v0, %v1782_v2  ;;  %v1726_v30 = vmul.f32 0.2, %v1427_v6 }
 0x16a   : > { %v1321_v20 = vpop.f32.mrf.mxu0  ;;  %v1789_v56 = vmax.f32 %v1425_v15, %v1725_v33 }
 0x16b   : > { %v1434_v21 = vpop.f32.mrf.mxu1  ;;  %v1729_v25 = vmul.f32 0.2, %v1429_v18  ;;  %v1431_v26 = vadd.f32 %v1430_v13, %v1318_v19  ;;  %2167 = vmatprep.mubr.bf16.mxu0 %v1842_v24  ;;  %v1322_v37 = vadd.f32 %v1321_v20, %v3964_v9  ;;  %v1790_v48 = vmax.f32 %v1427_v6, %v1726_v30 }
 0x16c   : > { %v1323_v31 = vpop.f32.mrf.mxu0  ;;  %2168 = vmatmul.mubr.bf16.gmra.mxu0 %v1841_v27 }
 0x16d   : > { %v1436_v32 = vpop.f32.mrf.mxu1  ;;  %v1730_v36 = vmul.f32 0.2, %v1431_v26  ;;  %v1324_v38 = vadd.f32 %v1323_v31, %v3967_v12  ;;  %v1793_v43 = vmax.f32 %v1429_v18, %v1729_v25  ;;  %v1435_v49 = vadd.f32 %v1434_v21, %v1322_v37 }
 0x16e   : > { %v1325_v39 = vpop.f32.mrf.mxu0 }
 0x16f   : > { %v1438_v42 = vpop.f32.mrf.mxu1  ;;  %v1794_v44 = vmax.f32 %v1431_v26, %v1730_v36  ;;  %v1326_v45 = vadd.f32 %v1325_v39, %v3964_v9  ;;  %v1437_v50 = vadd.f32 %v1436_v32, %v1324_v38  ;;  %v1845_v22 = vpack.c.bf16 %v1793_v43, %v1789_v56 }
 0x170   : > { %v1327_v52 = vpop.f32.mrf.mxu0  ;;  %v1733_v34 = vmul.f32 0.2, %v1435_v49 }
 0x171   : > { %v1440_v53 = vpop.f32.mrf.mxu1  ;;  %v1439_v51 = vadd.f32 %v1438_v42, %v1326_v45  ;;  %v1328_v4 = vadd.f32 %v1327_v52, %v3967_v12  ;;  %v1846_v11 = vpack.c.bf16 %v1794_v44, %v1790_v48  ;;  %v1734_v23 = vmul.f32 0.2, %v1437_v50 }
 0x172   : > { %v1331_v5 = vpop.f32.mrf.mxu0  ;;  %v1797_v62 = vmax.f32 %v1435_v49, %v1733_v34 }
 0x173   : > { %v1444_v10 = vpop.f32.mrf.mxu1  ;;  %v1737_v16 = vmul.f32 0.2, %v1439_v51  ;;  %v1441_v17 = vadd.f32 %v1440_v53, %v1328_v4  ;;  %2175 = vmatprep.mubr.bf16.mxu0 %v1846_v11  ;;  %v1332_v57 = vadd.f32 %v1331_v5, %v3964_v9  ;;  %v1798_v58 = vmax.f32 %v1437_v50, %v1734_v23 }
 0x174   : > { %v1333_v28 = vpop.f32.mrf.mxu0  ;;  %2176 = vmatmul.mubr.bf16.gmra.mxu0 %v1845_v22 }
 0x175   : > { %v1446_v29 = vpop.f32.mrf.mxu1  ;;  %v1738_v35 = vmul.f32 0.2, %v1441_v17  ;;  %v1334_v40 = vadd.f32 %v1333_v28, %v3967_v12  ;;  %v1801_v47 = vmax.f32 %v1439_v51, %v1737_v16  ;;  %v1445_v63 = vadd.f32 %v1444_v10, %v1332_v57 }
 0x176   : > { %v1335_v41 = vpop.f32.mrf.mxu0 }
 0x177   : > { %v1448_v46 = vpop.f32.mrf.mxu1  ;;  %v1802_v54 = vmax.f32 %v1441_v17, %v1738_v35  ;;  %v1336_v55 = vadd.f32 %v1335_v41, %v3964_v9  ;;  %v1447_v59 = vadd.f32 %v1446_v29, %v1334_v40  ;;  %v1849_v15 = vpack.c.bf16 %v1801_v47, %v1797_v62 }
 0x178   : > { %v1337_v60 = vpop.f32.mrf.mxu0  ;;  %v1741_v21 = vmul.f32 0.2, %v1445_v63 }
 0x179   : > { %v1450_v61 = vpop.f32.mrf.mxu1  ;;  %v1449_v0 = vadd.f32 %v1448_v46, %v1336_v55  ;;  %v1338_v1 = vadd.f32 %v1337_v60, %v3967_v12  ;;  %v1850_v8 = vpack.c.bf16 %v1802_v54, %v1798_v58  ;;  %v1742_v18 = vmul.f32 0.2, %v1447_v59 }
 0x17a   : > { %v1341_v2 = vpop.f32.mrf.mxu0  ;;  %v1805_v42 = vmax.f32 %v1445_v63, %v1741_v21 }
 0x17b   : > { %v1454_v6 = vpop.f32.mrf.mxu1  ;;  %v1745_v13 = vmul.f32 0.2, %v1449_v0  ;;  %v1451_v14 = vadd.f32 %v1450_v61, %v1338_v1  ;;  %2183 = vmatprep.mubr.bf16.mxu0 %v1850_v8  ;;  %v1342_v25 = vadd.f32 %v1341_v2, %v3964_v9  ;;  %v1806_v36 = vmax.f32 %v1447_v59, %v1742_v18 }
 0x17c   : > { %v1343_v19 = vpop.f32.mrf.mxu0  ;;  %2184 = vmatmul.mubr.bf16.gmra.mxu0 %v1849_v15  ;;  %v451_v8 = vsub.s32 3, %v3954_v3 }
 0x17d   : > { %v1456_v20 = vpop.f32.mrf.mxu1  ;;  %v1746_v24 = vmul.f32 0.2, %v1451_v14  ;;  %v1344_v26 = vadd.f32 %v1343_v19, %v3967_v12  ;;  %v1809_v31 = vmax.f32 %v1449_v0, %v1745_v13  ;;  %v1455_v43 = vadd.f32 %v1454_v6, %v1342_v25 }
 0x17e   : > { %v1345_v27 = vpop.f32.mrf.mxu0  ;;  %v447_v6 = vsub.s32 2, %v3954_v3  ;;  %v4006_v3 = vrot.slane %v3960_v7, %v451_v8 }
 0x17f   : > { %v1458_v30 = vpop.f32.mrf.mxu1  ;;  %v1810_v32 = vmax.f32 %v1451_v14, %v1746_v24  ;;  %v1346_v33 = vadd.f32 %v1345_v27, %v3964_v9  ;;  %v1457_v37 = vadd.f32 %v1456_v20, %v1344_v26  ;;  %v1853_v49 = vpack.c.bf16 %v1809_v31, %v1805_v42 }
 0x180   : > { %v1347_v38 = vpop.f32.mrf.mxu0  ;;  %v1749_v10 = vmul.f32 0.2, %v1455_v43 }
 0x181   : > { %v1460_v39 = vpop.f32.mrf.mxu1  ;;  %v1459_v44 = vadd.f32 %v1458_v30, %v1346_v33  ;;  %v1348_v45 = vadd.f32 %v1347_v38, %v3967_v12  ;;  %v1854_v52 = vpack.c.bf16 %v1810_v32, %v1806_v36  ;;  %v1750_v51 = vmul.f32 0.2, %v1457_v37 }
 0x182   : > { %v1351_v48 = vpop.f32.mrf.mxu0  ;;  %v1813_v46 = vmax.f32 %v1455_v43, %v1749_v10  ;;  %v4003_v32 = vrot.slane %v3960_v7, %v447_v6 }
 0x183   : > { %v1464_v50 = vpop.f32.mrf.mxu1  ;;  %v1753_v53 = vmul.f32 0.2, %v1459_v44  ;;  %v1461_v56 = vadd.f32 %v1460_v39, %v1348_v45  ;;  %2191 = vmatprep.mubr.bf16.mxu0 %v1854_v52  ;;  %v1352_v16 = vadd.f32 %v1351_v48, %v3964_v9  ;;  %v1814_v35 = vmax.f32 %v1457_v37, %v1750_v51 }
 0x184   : > { %v1353_v4 = vpop.f32.mrf.mxu0  ;;  %2192 = vmatmul.mubr.bf16.gmra.mxu0 %v1853_v49 }
 0x185   : > { %v1466_v5 = vpop.f32.mrf.mxu1  ;;  %v1754_v11 = vmul.f32 0.2, %v1461_v56  ;;  %v1354_v17 = vadd.f32 %v1353_v4, %v3967_v12  ;;  %v1817_v28 = vmax.f32 %v1459_v44, %v1753_v53  ;;  %v1465_v47 = vadd.f32 %v1464_v50, %v1352_v16 }
 0x186   : > { %v1355_v22 = vpop.f32.mrf.mxu0 }
 0x187   : > { %v1468_v23 = vpop.f32.mrf.mxu1  ;;  %v1818_v29 = vmax.f32 %v1461_v56, %v1754_v11  ;;  %v1356_v34 = vadd.f32 %v1355_v22, %v3964_v9  ;;  %v1467_v57 = vadd.f32 %v1466_v5, %v1354_v17  ;;  %v1857_v63 = vpack.c.bf16 %v1817_v28, %v1813_v46 }
 0x188   : > { %v1357_v40 = vpop.f32.mrf.mxu0  ;;  %v1757_v13 = vmul.f32 0.2, %v1465_v47 }
 0x189   : > { %v1470_v41 = vpop.f32.mrf.mxu1  ;;  %v1469_v54 = vadd.f32 %v1468_v23, %v1356_v34  ;;  %v1358_v55 = vadd.f32 %v1357_v40, %v3967_v12  ;;  %v1858_v60 = vpack.c.bf16 %v1818_v29, %v1814_v35  ;;  %v1758_v0 = vmul.f32 0.2, %v1467_v57 }
 0x18a   : > { %v1361_v58 = vpop.f32.mrf.mxu0  ;;  %v1821_v33 = vmax.f32 %v1465_v47, %v1757_v13 }
 0x18b   : > { %v1474_v59 = vpop.f32.mrf.mxu1  ;;  %v1761_v61 = vmul.f32 0.2, %v1469_v54  ;;  %v1471_v62 = vadd.f32 %v1470_v41, %v1358_v55  ;;  %2199 = vmatprep.mubr.bf16.mxu0 %v1858_v60  ;;  %v1362_v15 = vadd.f32 %v1361_v58, %v3964_v9  ;;  %v1822_v26 = vmax.f32 %v1467_v57, %v1758_v0 }
 0x18c   : > { %v1363_v1 = vpop.f32.mrf.mxu0  ;;  %2200 = vmatmul.mubr.bf16.gmra.mxu0 %v1857_v63 }
 0x18d   : > { %v1476_v2 = vpop.f32.mrf.mxu1  ;;  %v1762_v14 = vmul.f32 0.2, %v1471_v62  ;;  %v1364_v18 = vadd.f32 %v1363_v1, %v3967_v12  ;;  %v1825_v21 = vmax.f32 %v1469_v54, %v1761_v61  ;;  %v1475_v36 = vadd.f32 %v1474_v59, %v1362_v15 }
 0x18e   : > { %v1365_v19 = vpop.f32.mrf.mxu0 }
 0x18f   : > { %v1478_v20 = vpop.f32.mrf.mxu1  ;;  %v1826_v24 = vmax.f32 %v1471_v62, %v1762_v14  ;;  %v1366_v25 = vadd.f32 %v1365_v19, %v3964_v9  ;;  %v1477_v27 = vadd.f32 %v1476_v2, %v1364_v18  ;;  %v1861_v45 = vpack.c.bf16 %v1825_v21, %v1821_v33 }
 0x190   : > { %v1367_v30 = vpop.f32.mrf.mxu0  ;;  %v1765_v56 = vmul.f32 0.2, %v1475_v36 }
 0x191   : > { %v1480_v31 = vpop.f32.mrf.mxu1  ;;  %v1479_v37 = vadd.f32 %v1478_v20, %v1366_v25  ;;  %v1368_v38 = vadd.f32 %v1367_v30, %v3967_v12  ;;  %v1862_v43 = vpack.c.bf16 %v1826_v24, %v1822_v26  ;;  %v1766_v48 = vmul.f32 0.2, %v1477_v27 }
 0x192   : > { %v1517_v39 = vpop.f32.mrf.mxu0  ;;  %v1829_v28 = vmax.f32 %v1475_v36, %v1765_v56 }
 0x193   : > { %v1630_v42 = vpop.f32.mrf.mxu1  ;;  %v1769_v44 = vmul.f32 0.2, %v1479_v37  ;;  %v1481_v9 = vadd.f32 %v1480_v31, %v1368_v38  ;;  %v1518_v50 = vadd.f32 %v1517_v39, %v4003_v32  ;;  %2207 = vmatprep.mubr.bf16.mxu0 %v1862_v43  ;;  %v1830_v16 = vmax.f32 %v1477_v27, %v1766_v48 }
 0x194   : > { %v1519_v52 = vpop.f32.mrf.mxu0  ;;  %2208 = vmatmul.mubr.bf16.gmra.mxu0 %v1861_v45 }
 0x195   : > { %v1632_v53 = vpop.f32.mrf.mxu1  ;;  %v1770_v7 = vmul.f32 0.2, %v1481_v9  ;;  %v1520_v49 = vadd.f32 %v1519_v52, %v4006_v3  ;;  %v1833_v12 = vmax.f32 %v1479_v37, %v1769_v44  ;;  %v1631_v17 = vadd.f32 %v1630_v42, %v1518_v50 }
 0x196   : > { %v1521_v51 = vpop.f32.mrf.mxu0 }
 0x197   : > { %v1634_v4 = vpop.f32.mrf.mxu1  ;;  %v1834_v5 = vmax.f32 %v1481_v9, %v1770_v7  ;;  %v1633_v10 = vadd.f32 %v1632_v53, %v1520_v49  ;;  %v1522_v11 = vadd.f32 %v1521_v51, %v4003_v32  ;;  %v1865_v54 = vpack.c.bf16 %v1833_v12, %v1829_v28 }
 0x198   : > { %v1523_v22 = vpop.f32.mrf.mxu0  ;;  %v1711_v55 = vmul.f32 0.2, %v1631_v17 }
 0x199   : > { %v1636_v23 = vpop.f32.mrf.mxu1  ;;  %v1635_v29 = vadd.f32 %v1634_v4, %v1522_v11  ;;  %v1524_v34 = vadd.f32 %v1523_v22, %v4006_v3  ;;  %v1866_v40 = vpack.c.bf16 %v1834_v5, %v1830_v16  ;;  %v1712_v41 = vmul.f32 0.2, %v1633_v10 }
 0x19a   : > { %v1527_v35 = vpop.f32.mrf.mxu0  ;;  %v1775_v8 = vmax.f32 %v1631_v17, %v1711_v55 }
 0x19b   : > { %v1640_v57 = vpop.f32.mrf.mxu1  ;;  %v1715_v46 = vmul.f32 0.2, %v1635_v29  ;;  %v1637_v47 = vadd.f32 %v1636_v23, %v1524_v34  ;;  %2215 = vmatprep.mubr.bf16.mxu0 %v1866_v40  ;;  %v1528_v61 = vadd.f32 %v1527_v35, %v4003_v32  ;;  %v1776_v2 = vmax.f32 %v1633_v10, %v1712_v41 }
 0x19c   : > { %v1529_v58 = vpop.f32.mrf.mxu0  ;;  %2216 = vmatmul.mubr.bf16.gmra.mxu0 %v1865_v54 }
 0x19d   : > { %v1642_v59 = vpop.f32.mrf.mxu1  ;;  %v1716_v60 = vmul.f32 0.2, %v1637_v47  ;;  %v1530_v62 = vadd.f32 %v1529_v58, %v4006_v3  ;;  %v1779_v63 = vmax.f32 %v1635_v29, %v1715_v46  ;;  %v1641_v19 = vadd.f32 %v1640_v57, %v1528_v61 }
 0x19e   : > { %v1531_v0 = vpop.f32.mrf.mxu0 }
 0x19f   : > { %v1644_v1 = vpop.f32.mrf.mxu1  ;;  %v1780_v6 = vmax.f32 %v1637_v47, %v1716_v60  ;;  %v1643_v13 = vadd.f32 %v1642_v59, %v1530_v62  ;;  %v1532_v14 = vadd.f32 %v1531_v0, %v4003_v32  ;;  %v1839_v24 = vpack.c.bf16 %v1779_v63, %v1775_v8 }
 0x1a0   : > { %v1533_v15 = vpop.f32.mrf.mxu0  ;;  %v1719_v38 = vmul.f32 0.2, %v1641_v19 }
 0x1a1   : > { %v1646_v18 = vpop.f32.mrf.mxu1  ;;  %v1534_v20 = vadd.f32 %v1533_v15, %v4006_v3  ;;  %v1840_v21 = vpack.c.bf16 %v1780_v6, %v1776_v2  ;;  %v1645_v25 = vadd.f32 %v1644_v1, %v1532_v14  ;;  %v1720_v31 = vmul.f32 0.2, %v1643_v13 }
 0x1a2   : > { %v1537_v26 = vpop.f32.mrf.mxu0  ;;  %v1783_v49 = vmax.f32 %v1641_v19, %v1719_v38 }
 0x1a3   : > { %v1650_v27 = vpop.f32.mrf.mxu1  ;;  %v1647_v30 = vadd.f32 %v1646_v18, %v1534_v20  ;;  %2256 = vmatprep.mubr.bf16.mxu1 %v1840_v21  ;;  %v1723_v33 = vmul.f32 0.2, %v1645_v25  ;;  %v1538_v42 = vadd.f32 %v1537_v26, %v4003_v32  ;;  %v1784_v52 = vmax.f32 %v1643_v13, %v1720_v31 }
 0x1a4   : > { %v1539_v36 = vpop.f32.mrf.mxu0  ;;  %2257 = vmatmul.mubr.bf16.vlgmr.msra.gmra.mxu1 %v1839_v24 }
 0x1a5   : > { %v1652_v37 = vpop.f32.mrf.mxu1  ;;  %v1724_v39 = vmul.f32 0.2, %v1647_v30  ;;  %v1540_v43 = vadd.f32 %v1539_v36, %v4006_v3  ;;  %v1787_v45 = vmax.f32 %v1645_v25, %v1723_v33  ;;  %v1651_v51 = vadd.f32 %v1650_v27, %v1538_v42 }
 0x1a6   : > { %v1541_v44 = vpop.f32.mrf.mxu0 }
 0x1a7   : > { %v1654_v9 = vpop.f32.mrf.mxu1  ;;  %v1788_v48 = vmax.f32 %v1647_v30, %v1724_v39  ;;  %v1542_v50 = vadd.f32 %v1541_v44, %v4003_v32  ;;  %v1653_v53 = vadd.f32 %v1652_v37, %v1540_v43  ;;  %v1843_v22 = vpack.c.bf16 %v1787_v45, %v1783_v49 }
 0x1a8   : > { %v1543_v56 = vpop.f32.mrf.mxu0  ;;  %v1727_v34 = vmul.f32 0.2, %v1651_v51 }
 0x1a9   : > { %v1656_v7 = vpop.f32.mrf.mxu1  ;;  %v1655_v4 = vadd.f32 %v1654_v9, %v1542_v50  ;;  %v1544_v12 = vadd.f32 %v1543_v56, %v4006_v3  ;;  %v1844_v11 = vpack.c.bf16 %v1788_v48, %v1784_v52  ;;  %v1728_v23 = vmul.f32 0.2, %v1653_v53 }
 0x1aa   : > { %v1547_v5 = vpop.f32.mrf.mxu0  ;;  %v1791_v62 = vmax.f32 %v1651_v51, %v1727_v34 }
 0x1ab   : > { %v1660_v10 = vpop.f32.mrf.mxu1  ;;  %v1731_v16 = vmul.f32 0.2, %v1655_v4  ;;  %v1657_v17 = vadd.f32 %v1656_v7, %v1544_v12  ;;  %2264 = vmatprep.mubr.bf16.mxu1 %v1844_v11  ;;  %v1548_v57 = vadd.f32 %v1547_v5, %v4003_v32  ;;  %v1792_v58 = vmax.f32 %v1653_v53, %v1728_v23 }
 0x1ac   : > { %v1549_v28 = vpop.f32.mrf.mxu0  ;;  %2265 = vmatmul.mubr.bf16.gmra.mxu1 %v1843_v22 }
 0x1ad   : > { %v1662_v29 = vpop.f32.mrf.mxu1  ;;  %v1732_v35 = vmul.f32 0.2, %v1657_v17  ;;  %v1550_v40 = vadd.f32 %v1549_v28, %v4006_v3  ;;  %v1795_v47 = vmax.f32 %v1655_v4, %v1731_v16  ;;  %v1661_v63 = vadd.f32 %v1660_v10, %v1548_v57 }
 0x1ae   : > { %v1551_v41 = vpop.f32.mrf.mxu0 }
 0x1af   : > { %v1664_v46 = vpop.f32.mrf.mxu1  ;;  %v1796_v54 = vmax.f32 %v1657_v17, %v1732_v35  ;;  %v1552_v55 = vadd.f32 %v1551_v41, %v4003_v32  ;;  %v1663_v59 = vadd.f32 %v1662_v29, %v1550_v40  ;;  %v1847_v15 = vpack.c.bf16 %v1795_v47, %v1791_v62 }
 0x1b0   : > { %v1553_v60 = vpop.f32.mrf.mxu0  ;;  %v1735_v21 = vmul.f32 0.2, %v1661_v63 }
 0x1b1   : > { %v1666_v61 = vpop.f32.mrf.mxu1  ;;  %v1665_v0 = vadd.f32 %v1664_v46, %v1552_v55  ;;  %v1554_v1 = vadd.f32 %v1553_v60, %v4006_v3  ;;  %v1848_v8 = vpack.c.bf16 %v1796_v54, %v1792_v58  ;;  %v1736_v18 = vmul.f32 0.2, %v1663_v59 }
 0x1b2   : > { %v1557_v2 = vpop.f32.mrf.mxu0  ;;  %v1799_v43 = vmax.f32 %v1661_v63, %v1735_v21 }
 0x1b3   : > { %v1670_v6 = vpop.f32.mrf.mxu1  ;;  %v1739_v13 = vmul.f32 0.2, %v1665_v0  ;;  %v1667_v14 = vadd.f32 %v1666_v61, %v1554_v1  ;;  %2272 = vmatprep.mubr.bf16.mxu1 %v1848_v8  ;;  %v1558_v25 = vadd.f32 %v1557_v2, %v4003_v32  ;;  %v1800_v37 = vmax.f32 %v1663_v59, %v1736_v18 }
 0x1b4   : > { %v1559_v19 = vpop.f32.mrf.mxu0  ;;  %2273 = vmatmul.mubr.bf16.gmra.mxu1 %v1847_v15 }
 0x1b5   : > { %v1672_v20 = vpop.f32.mrf.mxu1  ;;  %v1740_v24 = vmul.f32 0.2, %v1667_v14  ;;  %v1560_v26 = vadd.f32 %v1559_v19, %v4006_v3  ;;  %v1803_v31 = vmax.f32 %v1665_v0, %v1739_v13  ;;  %v1671_v44 = vadd.f32 %v1670_v6, %v1558_v25 }
 0x1b6   : > { %v1561_v27 = vpop.f32.mrf.mxu0 }
 0x1b7   : > { %v1674_v30 = vpop.f32.mrf.mxu1  ;;  %v1804_v33 = vmax.f32 %v1667_v14, %v1740_v24  ;;  %v1562_v36 = vadd.f32 %v1561_v27, %v4003_v32  ;;  %v1673_v38 = vadd.f32 %v1672_v20, %v1560_v26  ;;  %v1851_v7 = vpack.c.bf16 %v1803_v31, %v1799_v43 }
 0x1b8   : > { %v1563_v39 = vpop.f32.mrf.mxu0  ;;  %v1743_v12 = vmul.f32 0.2, %v1671_v44 }
 0x1b9   : > { %v1676_v42 = vpop.f32.mrf.mxu1  ;;  %v1675_v9 = vadd.f32 %v1674_v30, %v1562_v36  ;;  %v1564_v45 = vadd.f32 %v1563_v39, %v4006_v3  ;;  %v1852_v52 = vpack.c.bf16 %v1804_v33, %v1800_v37  ;;  %v1744_v49 = vmul.f32 0.2, %v1673_v38 }
 0x1ba   : > { %v1567_v48 = vpop.f32.mrf.mxu0  ;;  %v1807_v40 = vmax.f32 %v1671_v44, %v1743_v12 }
 0x1bb   : > { %v1680_v50 = vpop.f32.mrf.mxu1  ;;  %v1747_v53 = vmul.f32 0.2, %v1675_v9  ;;  %v1677_v56 = vadd.f32 %v1676_v42, %v1564_v45  ;;  %2280 = vmatprep.mubr.bf16.mxu1 %v1852_v52  ;;  %v1568_v10 = vadd.f32 %v1567_v48, %v4003_v32  ;;  %v1808_v29 = vmax.f32 %v1673_v38, %v1744_v49 }
 0x1bc   : > { %v1569_v51 = vpop.f32.mrf.mxu0  ;;  %2281 = vmatmul.mubr.bf16.gmra.mxu1 %v1851_v7 }
 0x1bd   : > { %v1682_v4 = vpop.f32.mrf.mxu1  ;;  %v1748_v5 = vmul.f32 0.2, %v1677_v56  ;;  %v1570_v11 = vadd.f32 %v1569_v51, %v4006_v3  ;;  %v1811_v22 = vmax.f32 %v1675_v9, %v1747_v53  ;;  %v1681_v41 = vadd.f32 %v1680_v50, %v1568_v10 }
 0x1be   : > { %v1571_v16 = vpop.f32.mrf.mxu0 }
 0x1bf   : > { %v1684_v17 = vpop.f32.mrf.mxu1  ;;  %v1812_v23 = vmax.f32 %v1677_v56, %v1748_v5  ;;  %v1572_v28 = vadd.f32 %v1571_v16, %v4003_v32  ;;  %v1683_v34 = vadd.f32 %v1682_v4, %v1570_v11  ;;  %v1855_v61 = vpack.c.bf16 %v1811_v22, %v1807_v40 }
 0x1c0   : > { %v1573_v35 = vpop.f32.mrf.mxu0  ;;  %v1751_v1 = vmul.f32 0.2, %v1681_v41 }
 0x1c1   : > { %v1686_v57 = vpop.f32.mrf.mxu1  ;;  %v1685_v46 = vadd.f32 %v1684_v17, %v1572_v28  ;;  %v1574_v47 = vadd.f32 %v1573_v35, %v4006_v3  ;;  %v1856_v58 = vpack.c.bf16 %v1812_v23, %v1808_v29  ;;  %v1752_v62 = vmul.f32 0.2, %v1683_v34 }
 0x1c2   : > { %v1577_v54 = vpop.f32.mrf.mxu0  ;;  %v1815_v26 = vmax.f32 %v1681_v41, %v1751_v1 }
 0x1c3   : > { %v1690_v55 = vpop.f32.mrf.mxu1  ;;  %v1755_v59 = vmul.f32 0.2, %v1685_v46  ;;  %v1687_v60 = vadd.f32 %v1686_v57, %v1574_v47  ;;  %2288 = vmatprep.mubr.bf16.mxu1 %v1856_v58  ;;  %v1578_v6 = vadd.f32 %v1577_v54, %v4003_v32  ;;  %v1816_v20 = vmax.f32 %v1683_v34, %v1752_v62 }
 0x1c4   : > { %v1579_v63 = vpop.f32.mrf.mxu0  ;;  %2289 = vmatmul.mubr.bf16.gmra.mxu1 %v1855_v61 }
 0x1c5   : > { %v1692_v0 = vpop.f32.mrf.mxu1  ;;  %v1756_v2 = vmul.f32 0.2, %v1687_v60  ;;  %v1580_v8 = vadd.f32 %v1579_v63, %v4006_v3  ;;  %v1819_v15 = vmax.f32 %v1685_v46, %v1755_v59  ;;  %v1691_v27 = vadd.f32 %v1690_v55, %v1578_v6 }
 0x1c6   : > { %v1581_v13 = vpop.f32.mrf.mxu0 }
 0x1c7   : > { %v1694_v14 = vpop.f32.mrf.mxu1  ;;  %v1820_v18 = vmax.f32 %v1687_v60, %v1756_v2  ;;  %v1582_v19 = vadd.f32 %v1581_v13, %v4003_v32  ;;  %v1693_v21 = vadd.f32 %v1692_v0, %v1580_v8  ;;  %v1859_v42 = vpack.c.bf16 %v1819_v15, %v1815_v26 }
 0x1c8   : > { %v1583_v24 = vpop.f32.mrf.mxu0  ;;  %v1759_v45 = vmul.f32 0.2, %v1691_v27 }
 0x1c9   : > { %v1696_v25 = vpop.f32.mrf.mxu1  ;;  %v1695_v30 = vadd.f32 %v1694_v14, %v1582_v19  ;;  %v1584_v31 = vadd.f32 %v1583_v24, %v4006_v3  ;;  %v1860_v37 = vpack.c.bf16 %v1820_v18, %v1816_v20  ;;  %v1760_v43 = vmul.f32 0.2, %v1693_v21 }
 0x1ca   : > { %v1587_v33 = vpop.f32.mrf.mxu0  ;;  %v1823_v10 = vmax.f32 %v1691_v27, %v1759_v45 }
 0x1cb   : > { %v1700_v36 = vpop.f32.mrf.mxu1  ;;  %v1763_v38 = vmul.f32 0.2, %v1695_v30  ;;  %v1697_v39 = vadd.f32 %v1696_v25, %v1584_v31  ;;  %2296 = vmatprep.mubr.bf16.mxu1 %v1860_v37  ;;  %v1588_v50 = vadd.f32 %v1587_v33, %v4003_v32  ;;  %v1824_v12 = vmax.f32 %v1693_v21, %v1760_v43 }
 0x1cc   : > { %v1589_v44 = vpop.f32.mrf.mxu0  ;;  %2297 = vmatmul.mubr.bf16.gmra.mxu1 %v1859_v42  ;;  %v4043_v21 = vstv %s1933_s14 }
 0x1cd   : > { %v1702_v9 = vpop.f32.mrf.mxu1  ;;  %v1764_v48 = vmul.f32 0.2, %v1697_v39  ;;  %v1590_v52 = vadd.f32 %v1589_v44, %v4006_v3  ;;  %v1827_v7 = vmax.f32 %v1695_v30, %v1763_v38  ;;  %v1701_v11 = vadd.f32 %v1700_v36, %v1588_v50 }
 0x1ce   : > { %v1591_v53 = vpop.f32.mrf.mxu0 }
 0x1cf   : > { %v1704_v56 = vpop.f32.mrf.mxu1  ;;  %v1828_v49 = vmax.f32 %v1697_v39, %v1764_v48  ;;  %v1703_v51 = vadd.f32 %v1702_v9, %v1590_v52  ;;  %v1592_v4 = vadd.f32 %v1591_v53, %v4003_v32  ;;  %v1863_v35 = vpack.c.bf16 %v1827_v7, %v1823_v10 }
 0x1d0   : > { %v1593_v5 = vpop.f32.mrf.mxu0  ;;  %v1767_v57 = vmul.f32 0.2, %v1701_v11 }
 0x1d1   : > { %v1705_v16 = vadd.f32 %v1704_v56, %v1592_v4  ;;  %v1594_v17 = vadd.f32 %v1593_v5, %v4006_v3  ;;  %v1706_v22 = vpop.f32.mrf.mxu1  ;;  %v1864_v23 = vpack.c.bf16 %v1828_v49, %v1824_v12  ;;  %v1768_v28 = vmul.f32 0.2, %v1703_v51 }
 0x1d2   : > { %v1831_v47 = vmax.f32 %v1701_v11, %v1767_v57 }
 0x1d3   : > { %v1771_v29 = vmul.f32 0.2, %v1705_v16  ;;  %v1707_v34 = vadd.f32 %v1706_v22, %v1594_v17  ;;  %2304 = vmatprep.mubr.bf16.mxu1 %v1864_v23  ;;  %v1832_v41 = vmax.f32 %v1703_v51, %v1768_v28 }
 0x1d4   : > { %2305 = vmatmul.mubr.bf16.gmra.mxu1 %v1863_v35 }
 0x1d5   : > { %v1772_v40 = vmul.f32 0.2, %v1707_v34  ;;  %v1835_v46 = vmax.f32 %v1705_v16, %v1771_v29 }
 0x1d7   : > { %v1836_v32 = vmax.f32 %v1707_v34, %v1772_v40  ;;  %v1867_v55 = vpack.c.bf16 %v1835_v46, %v1831_v47 }
 0x1d9   : > { %v1868_v54 = vpack.c.bf16 %v1836_v32, %v1832_v41 }
 0x1db   : > { %2312 = vmatprep.mubr.bf16.mxu1 %v1868_v54 }
 0x1dc   : > { %2313 = vmatmul.mubr.bf16.gmra.mxu1 %v1867_v55 }
 0x224   : > { %v2883_v58 = vpop.f32.mrf.mxu0 }
 0x226   : > { %v2884_v3 = vpop.f32.mrf.mxu0 }
 0x227   : > { %v2885_v20 = vadd.f32 %v2884_v3, %v2883_v58 }
 0x228   : > { %v2886_v59 = vpop.f32.mrf.mxu0 }
 0x229   : > { %v2162_v27 = vadd.f32 %v2885_v20, %v4043_v21 }
 0x22a   : > { %v2887_v60 = vpop.f32.mrf.mxu0 }
 0x22b   : > { %v2888_v30 = vadd.f32 %v2887_v60, %v2886_v59 }
 0x22c   : > { %v2889_v61 = vpop.f32.mrf.mxu0 }
 0x22d   : > { %v2165_v39 = vadd.f32 %v2888_v30, %v4043_v21 }
 0x22e   : > { %v2890_v62 = vpop.f32.mrf.mxu0 }
 0x22f   : > { %v2891_v43 = vadd.f32 %v2890_v62, %v2889_v61 }
 0x230   : > { %v2892_v63 = vpop.f32.mrf.mxu0 }
 0x231   : > { %v2170_v50 = vadd.f32 %v2891_v43, %v4043_v21 }
 0x232   : > { %v2893_v0 = vpop.f32.mrf.mxu0 }
 0x233   : > { %v2894_v52 = vadd.f32 %v2893_v0, %v2892_v63 }
 0x234   : > { %v2895_v1 = vpop.f32.mrf.mxu0 }
 0x235   : > { %v2173_v4 = vadd.f32 %v2894_v52, %v4043_v21 }
 0x236   : > { %v2896_v2 = vpop.f32.mrf.mxu0 }
 0x237   : > { %v2897_v12 = vadd.f32 %v2896_v2, %v2895_v1 }
 0x238   : > { %v2898_v6 = vpop.f32.mrf.mxu0 }
 0x239   : > { %v2178_v22 = vadd.f32 %v2897_v12, %v4043_v21 }
 0x23a   : > { %v2899_v8 = vpop.f32.mrf.mxu0 }
 0x23b   : > { %v2900_v23 = vadd.f32 %v2899_v8, %v2898_v6 }
 0x23c   : > { %v2901_v13 = vpop.f32.mrf.mxu0 }
 0x23d   : > { %v2181_v40 = vadd.f32 %v2900_v23, %v4043_v21 }
 0x23e   : > { %v2902_v14 = vpop.f32.mrf.mxu0 }
 0x23f   : > { %v2903_v41 = vadd.f32 %v2902_v14, %v2901_v13 }
 0x240   : > { %v2904_v15 = vpop.f32.mrf.mxu0 }
 0x241   : > { %v2186_v58 = vadd.f32 %v2903_v41, %v4043_v21 }
 0x242   : > { %v2905_v18 = vpop.f32.mrf.mxu0 }
 0x243   : > { %v2906_v3 = vadd.f32 %v2905_v18, %v2904_v15 }
 0x244   : > { %v4041_v19 = vpop.f32.mrf.mxu0 }
 0x245   : > { %v2189_v0 = vadd.f32 %v2906_v3, %v4043_v21 }
 0x246   : > { %v2908_v25 = vpop.f32.mrf.mxu0 }
 0x247   : > { %v2909_v1 = vadd.f32 %v2908_v25, %v4041_v19 }
 0x248   : > { %v2910_v36 = vpop.f32.mrf.mxu0 }
 0x249   : > { %v2194_v15 = vadd.f32 %v2909_v1, %v4043_v21 }
 0x24a   : > { %v2911_v44 = vpop.f32.mrf.mxu0 }
 0x24b   : > { %v2912_v18 = vadd.f32 %v2911_v44, %v2910_v36 }
 0x24c   : > { %v2913_v56 = vpop.f32.mrf.mxu0 }
 0x24d   : > { %v2197_v19 = vadd.f32 %v2912_v18, %v4043_v21 }
 0x24e   : > { %v2914_v10 = vpop.f32.mrf.mxu0 }
 0x24f   : > { %v2915_v25 = vadd.f32 %v2914_v10, %v2913_v56 }
 0x250   : > { %v2916_v29 = vpop.f32.mrf.mxu0 }
 0x251   : > { %v2202_v36 = vadd.f32 %v2915_v25, %v4043_v21 }
 0x252   : > { %v2917_v32 = vpop.f32.mrf.mxu0 }
 0x254   : > { %v2919_v60 = vpop.f32.mrf.mxu0 }
 0x256   : > { %v2920_v6 = vpop.f32.mrf.mxu0 }
 0x257   : > { %v2921_v52 = vadd.f32 %v2920_v6, %v2919_v60 }
 0x264   : > { %v2947_v24 = vpop.f32.mrf.mxu1 }
 0x266   : > { %v2948_v26 = vpop.f32.mrf.mxu1 }
 0x267   : > { %v2949_v31 = vadd.f32 %v2948_v26, %v2947_v24  ;;  %v2922_v24 = vpop.f32.mrf.mxu0 }
 0x268   : > { %v2950_v33 = vpop.f32.mrf.mxu1 }
 0x269   : > { %v2259_v37 = vadd.f32 %v2949_v31, %v2162_v27 }
 0x26a   : > { %v2951_v38 = vpop.f32.mrf.mxu1 }
 0x26b   : > { %2322 = vst.msk [vmem:[%s4048_s16] sm:$0xff] %vm2321_vm0, %v2259_v37  ;;  %v2952_v42 = vadd.f32 %v2951_v38, %v2950_v33  ;;  %v2923_v33 = vpop.f32.mrf.mxu0 }
 0x26c   : > { %v2953_v45 = vpop.f32.mrf.mxu1  ;;  %v2924_v12 = vadd.f32 %v2923_v33, %v2922_v24 }
 0x26d   : > { %v2262_v9 = vadd.f32 %v2952_v42, %v2165_v39  ;;  %v2918_v42 = vadd.f32 %v2917_v32, %v2916_v29  ;;  %v2925_v44 = vpop.f32.mrf.mxu0 }
 0x26e   : > { %v2954_v48 = vpop.f32.mrf.mxu1 }
 0x26f   : > { %2323 = vst.msk [vmem:[%s4048_s16 + $0x8] sm:$0xff] %vm2321_vm0, %v2262_v9  ;;  %v2955_v53 = vadd.f32 %v2954_v48, %v2953_v45  ;;  %v2926_v56 = vpop.f32.mrf.mxu0 }
 0x270   : > { %v2956_v7 = vpop.f32.mrf.mxu1  ;;  %v2927_v23 = vadd.f32 %v2926_v56, %v2925_v44 }
 0x271   : > { %v2267_v49 = vadd.f32 %v2955_v53, %v2170_v50  ;;  %v2205_v50 = vadd.f32 %v2918_v42, %v4043_v21  ;;  %v2928_v10 = vpop.f32.mrf.mxu0 }
 0x272   : > { %v2957_v51 = vpop.f32.mrf.mxu1 }
 0x273   : > { %2324 = vst.msk [vmem:[%s4048_s16 + $0x10] sm:$0xff] %vm2321_vm0, %v2267_v49  ;;  %v2958_v5 = vadd.f32 %v2957_v51, %v2956_v7  ;;  %v2929_v29 = vpop.f32.mrf.mxu0 }
 0x274   : > { %v2959_v11 = vpop.f32.mrf.mxu1  ;;  %v2930_v41 = vadd.f32 %v2929_v29, %v2928_v10 }
 0x275   : > { %v2270_v16 = vadd.f32 %v2958_v5, %v2173_v4  ;;  %v2210_v4 = vadd.f32 %v2921_v52, %v4043_v21 }
 0x276   : > { %v2960_v17 = vpop.f32.mrf.mxu1 }
 0x277   : > { %2325 = vst.msk [vmem:[%s4048_s16 + $0x18] sm:$0xff] %vm2321_vm0, %v2270_v16  ;;  %v2961_v28 = vadd.f32 %v2960_v17, %v2959_v11 }
 0x278   : > { %v2962_v34 = vpop.f32.mrf.mxu1 }
 0x279   : > { %v2275_v35 = vadd.f32 %v2961_v28, %v2178_v22  ;;  %v2213_v22 = vadd.f32 %v2924_v12, %v4043_v21 }
 0x27a   : > { %v2963_v57 = vpop.f32.mrf.mxu1 }
 0x27b   : > { %2326 = vst.msk [vmem:[%s4048_s16 + $0x20] sm:$0xff] %vm2321_vm0, %v2275_v35  ;;  %v2964_v46 = vadd.f32 %v2963_v57, %v2962_v34 }
 0x27c   : > { %v2965_v47 = vpop.f32.mrf.mxu1 }
 0x27d   : > { %v2278_v54 = vadd.f32 %v2964_v46, %v2181_v40  ;;  %v2218_v40 = vadd.f32 %v2927_v23, %v4043_v21 }
 0x27e   : > { %v2966_v55 = vpop.f32.mrf.mxu1 }
 0x27f   : > { %2327 = vst.msk [vmem:[%s4048_s16 + $0x28] sm:$0xff] %vm2321_vm0, %v2278_v54  ;;  %v2967_v59 = vadd.f32 %v2966_v55, %v2965_v47  ;;  %v2221_v55 = vadd.f32 %v2930_v41, %v4043_v21 }
 0x280   : > { %v2968_v61 = vpop.f32.mrf.mxu1 }
 0x281   : > { %v2283_v62 = vadd.f32 %v2967_v59, %v2186_v58 }
 0x282   : > { %v2969_v63 = vpop.f32.mrf.mxu1 }
 0x283   : > { %2328 = vst.msk [vmem:[%s4048_s16 + $0x30] sm:$0xff] %vm2321_vm0, %v2283_v62  ;;  %v2970_v2 = vadd.f32 %v2969_v63, %v2968_v61 }
 0x284   : > { %v2971_v8 = vpop.f32.mrf.mxu1 }
 0x285   : > { %v2286_v13 = vadd.f32 %v2970_v2, %v2189_v0 }
 0x286   : > { %v2972_v14 = vpop.f32.mrf.mxu1 }
 0x287   : > { %2329 = vst.msk [vmem:[%s4048_s16 + $0x38] sm:$0xff] %vm2321_vm0, %v2286_v13  ;;  %v2973_v20 = vadd.f32 %v2972_v14, %v2971_v8 }
 0x288   : > { %v2974_v26 = vpop.f32.mrf.mxu1 }
 0x289   : > { %v2291_v27 = vadd.f32 %v2973_v20, %v2194_v15 }
 0x28a   : > { %v2975_v30 = vpop.f32.mrf.mxu1 }
 0x28b   : > { %2330 = vst.msk [vmem:[%s4048_s16 + $0x40] sm:$0xff] %vm2321_vm0, %v2291_v27  ;;  %v2976_v31 = vadd.f32 %v2975_v30, %v2974_v26 }
 0x28c   : > { %v2977_v37 = vpop.f32.mrf.mxu1 }
 0x28d   : > { %v2294_v38 = vadd.f32 %v2976_v31, %v2197_v19 }
 0x28e   : > { %v2978_v39 = vpop.f32.mrf.mxu1 }
 0x28f   : > { %2331 = vst.msk [vmem:[%s4048_s16 + $0x48] sm:$0xff] %vm2321_vm0, %v2294_v38  ;;  %v2979_v43 = vadd.f32 %v2978_v39, %v2977_v37 }
 0x290   : > { %v2980_v9 = vpop.f32.mrf.mxu1 }
 0x291   : > { %v2299_v45 = vadd.f32 %v2979_v43, %v2202_v36 }
 0x292   : > { %v2981_v48 = vpop.f32.mrf.mxu1 }
 0x293   : > { %2332 = vst.msk [vmem:[%s4048_s16 + $0x50] sm:$0xff] %vm2321_vm0, %v2299_v45  ;;  %v2982_v53 = vadd.f32 %v2981_v48, %v2980_v9 }
 0x294   : > { %v2983_v7 = vpop.f32.mrf.mxu1 }
 0x295   : > { %v2302_v49 = vadd.f32 %v2982_v53, %v2205_v50 }
 0x296   : > { %v2984_v51 = vpop.f32.mrf.mxu1 }
 0x297   : > { %2333 = vst.msk [vmem:[%s4048_s16 + $0x58] sm:$0xff] %vm2321_vm0, %v2302_v49  ;;  %v2985_v5 = vadd.f32 %v2984_v51, %v2983_v7 }
 0x298   : > { %v2986_v11 = vpop.f32.mrf.mxu1 }
 0x299   : > { %v2307_v16 = vadd.f32 %v2985_v5, %v2210_v4 }
 0x29a   : > { %v2987_v17 = vpop.f32.mrf.mxu1 }
 0x29b   : > { %2334 = vst.msk [vmem:[%s4048_s16 + $0x60] sm:$0xff] %vm2321_vm0, %v2307_v16  ;;  %v2988_v28 = vadd.f32 %v2987_v17, %v2986_v11 }
 0x29c   : > { %v2989_v34 = vpop.f32.mrf.mxu1 }
 0x29d   : > { %v2310_v35 = vadd.f32 %v2988_v28, %v2213_v22 }
 0x29e   : > { %v2990_v57 = vpop.f32.mrf.mxu1 }
 0x29f   : > { %2335 = vst.msk [vmem:[%s4048_s16 + $0x68] sm:$0xff] %vm2321_vm0, %v2310_v35  ;;  %v2991_v46 = vadd.f32 %v2990_v57, %v2989_v34 }
 0x2a0   : > { %v2992_v32 = vpop.f32.mrf.mxu1 }
 0x2a1   : > { %v2315_v47 = vadd.f32 %v2991_v46, %v2218_v40 }
 0x2a2   : > { %v2993_v54 = vpop.f32.mrf.mxu1 }
 0x2a3   : > { %2336 = vst.msk [vmem:[%s4048_s16 + $0x70] sm:$0xff] %vm2321_vm0, %v2315_v47  ;;  %v2994_v58 = vadd.f32 %v2993_v54, %v2992_v32  ;;  %2344 = sbr.rel (!%p4212_p5) target bundleno = 721 (0x2d1), region = 52 }
 0x2a5   : > { %v2318_v3 = vadd.f32 %v2994_v58, %v2221_v55 }
 0x2a7   : > { %2337 = vst.msk [vmem:[%s4048_s16 + $0x78] sm:$0xff] %vm2321_vm0, %v2318_v3 }
 0x2a8   : > { %s4223_s19 = smov (!%p2347_p11, %s2346_s19), 16 }
 0x2a9   : > { %s2846_s10 = sshll.u32 %s4223_s19, 7 }
 0x2aa   : > { %p2849_p4 = scmp.eq.s32.totalorder %s2846_s10, 0 }
 0x2ab   : > { %s4110_s30 = sshrl.u32 (!%p2849_p4), %s4223_s19, 4 }
 0x2ac   : > { %2355 = sbr.rel (%p2849_p4) target bundleno = 721 (0x2d1), region = 56  ;;  %p2850_p2 = scmp.le.s32.totalorder (!%p2849_p4), %s4110_s30, 0 }
 0x2b1   : > { %2579 = sbr.rel (%p2850_p2) target bundleno = 704 (0x2c0), region = 138  ;;  %s4213_s4 = smov (!%p2850_p2), %s4104_s7 }
 0x2b2   : > { %s4214_s11 = smov (!%p2850_p2), %s4048_s16  ;;  %s4119_s29 = smov (!%p2850_p2), 0  }
 0x2b3   : > { %s4121_s6 = smov (!%p2850_p2), 0  }
 0x2b6 LB: >> { %v2448_v21 = vld [vmem:[%s3509_s11] sm:$0xff]  ;;  %v2450_v59 = vld [vmem:[%s3509_s11 + $0x8] sm:$0xff]  ;;  %v2452_v60 = vld [vmem:[%s3509_s11 + $0x10] sm:$0xff]  ;;  %s2480_s18 = sadd.s32 1, %s3513_s29  ;;  %s2442_s6 = sadd.s32 1, %s3517_s6   ;;  %s3517_s6 = sphi %s4121_s6, %s2442_s6   ;;  %s3513_s29 = sphi %s4119_s29, %s4215_s29   ;;  %s3509_s11 = sphi %s4214_s11, %s2485_s11   ;;  %s3505_s4 = sphi %s4213_s4, %s2486_s4  }
 0x2b7   : >> { %2449 = vst [vmem:[%s3505_s4] sm:$0xff] %v2448_v21  ;;  %2451 = vst [vmem:[%s3505_s4 + $0x8] sm:$0xff] %v2450_v59  ;;  %v2454_v61 = vld [vmem:[%s3509_s11 + $0x18] sm:$0xff]  ;;  %v2456_v62 = vld [vmem:[%s3509_s11 + $0x20] sm:$0xff]  ;;  %p2481_p3 = scmp.ge.s32.totalorder %s2480_s18, %s4110_s30  ;;  %p2441_p1 = scmp.ge.s32.totalorder %s2442_s6, %s4110_s30 }
 0x2b8   : >> { %2453 = vst [vmem:[%s3505_s4 + $0x10] sm:$0xff] %v2452_v60  ;;  %v2458_v63 = vld [vmem:[%s3509_s11 + $0x28] sm:$0xff]  ;;  %2455 = vst [vmem:[%s3505_s4 + $0x18] sm:$0xff] %v2454_v61  ;;  %v2460_v0 = vld [vmem:[%s3509_s11 + $0x30] sm:$0xff] }
 0x2b9   : >> { %2457 = vst [vmem:[%s3505_s4 + $0x20] sm:$0xff] %v2456_v62  ;;  %2459 = vst [vmem:[%s3505_s4 + $0x28] sm:$0xff] %v2458_v63  ;;  %v2462_v1 = vld [vmem:[%s3509_s11 + $0x38] sm:$0xff]  ;;  %v2464_v2 = vld [vmem:[%s3509_s11 + $0x40] sm:$0xff]  ;;  %s4225_s18 = smov (%p2481_p3, %s2480_s18), 0 }
 0x2ba   : >> { %2461 = vst [vmem:[%s3505_s4 + $0x30] sm:$0xff] %v2460_v0  ;;  %2463 = vst [vmem:[%s3505_s4 + $0x38] sm:$0xff] %v2462_v1  ;;  %v2466_v6 = vld [vmem:[%s3509_s11 + $0x48] sm:$0xff]  ;;  %v2468_v8 = vld [vmem:[%s3509_s11 + $0x50] sm:$0xff]  ;;  %s2851_s20 = sshll.u32 %s4225_s18, 7  ;;  %s4215_s29 = smov %s4225_s18 }
 0x2bb   : >> { %2465 = vst [vmem:[%s3505_s4 + $0x40] sm:$0xff] %v2464_v2  ;;  %v2470_v13 = vld [vmem:[%s3509_s11 + $0x58] sm:$0xff]  ;;  %2467 = vst [vmem:[%s3505_s4 + $0x48] sm:$0xff] %v2466_v6  ;;  %v2472_v14 = vld [vmem:[%s3509_s11 + $0x60] sm:$0xff]  ;;  %2444 = sbr.rel (!%p2441_p1) target bundleno = 694 (0x2b6), region = 144 }
 0x2bc   : >> { %2469 = vst [vmem:[%s3505_s4 + $0x50] sm:$0xff] %v2468_v8  ;;  %2471 = vst [vmem:[%s3505_s4 + $0x58] sm:$0xff] %v2470_v13  ;;  %v2474_v15 = vld [vmem:[%s3509_s11 + $0x68] sm:$0xff]  ;;  %v2476_v18 = vld [vmem:[%s3509_s11 + $0x70] sm:$0xff] }
 0x2bd   : >> { %2473 = vst [vmem:[%s3505_s4 + $0x60] sm:$0xff] %v2472_v14  ;;  %2475 = vst [vmem:[%s3505_s4 + $0x68] sm:$0xff] %v2474_v15  ;;  %v2478_v20 = vld [vmem:[%s3509_s11 + $0x78] sm:$0xff]  ;;  %s2485_s11 = scalar_lea.vmem %s4048_s16, %s2851_s20 [#allocation7]  }
 0x2be   : >> { %2477 = vst [vmem:[%s3505_s4 + $0x70] sm:$0xff] %v2476_v18  ;;  %2479 = vst [vmem:[%s3505_s4 + $0x78] sm:$0xff] %v2478_v20  ;;  %s2486_s4 = scalar_lea.vmem %s4104_s7, %s2851_s20  }
 0x2c0 PF: > { %s4179_s8 = sand.u32 15, %s4223_s19   ;;  %s2865_s9 = sshll.u32 %s4110_s30, 7 }
 0x2c1   : > { %s2491_s12 = scalar_lea.vmem %s4048_s16, %s2865_s9 [#allocation7]   ;;  %s2493_s23 = scalar_lea.vmem %s4104_s7, %s2865_s9  }
 0x2c2   : > { %p2856_p6 = scmp.le.s32.totalorder %s4179_s8, 0 }
 0x2c3   : > { %s3519_s13 = smov (!%p2856_p6), %s2493_s23   ;;  %s3523_s14 = smov (!%p2856_p6), %s2491_s12  }
 0x2c4   : > { %2593 = sbr.rel (%p2856_p6) target bundleno = 721 (0x2d1), region = 149  ;;  %s3527_s15 = smov (!%p2856_p6), 0  }
 0x2c5   : > { %s3531_s28 = smov (!%p2856_p6), 0  }
 0x2c9 LB: >> { %v2503_v24 = vld [vmem:[%s3525_s14] sm:$0xff]  ;;  %s2505_s17 = sadd.s32 1, %s3529_s15  ;;  %s2497_s28 = sadd.s32 1, %s3533_s28   ;;  %s3533_s28 = sphi %s3531_s28, %s2497_s28   ;;  %s3529_s15 = sphi %s3527_s15, %s3528_s15   ;;  %s3525_s14 = sphi %s3523_s14, %s2510_s14   ;;  %s3521_s13 = sphi %s3519_s13, %s2511_s13  }
 0x2ca   : >> { %2504 = vst [vmem:[%s3521_s13] sm:$0xff] %v2503_v24  ;;  %p2506_p7 = scmp.ge.s32.totalorder %s2505_s17, %s4179_s8  ;;  %p2496_p9 = scmp.ge.s32.totalorder %s2497_s28, %s4179_s8 }
 0x2cc   : >> { %s4227_s17 = smov (%p2506_p7, %s2505_s17), 0  ;;  %2499 = sbr.rel (!%p2496_p9) target bundleno = 713 (0x2c9), region = 155 }
 0x2cd   : >> { %s2857_s16 = sshll.u32 %s4227_s17, 3  ;;  %s3528_s15 = smov %s4227_s17  }
 0x2ce   : >> { %s2510_s14 = scalar_lea.vmem %s2491_s12, %s2857_s16 [#allocation7]   ;;  %s2511_s13 = scalar_lea.vmem %s2493_s23, %s2857_s16  }
 0x2d1 PF: > { %p17_p8 = scmp.ge.s32.totalorder %s3596_s24, 5   ;;  %s4216_s20 = smov %s3493_s21 }
 0x2d2   : > { %s4217_s21 = smov %s3497_s22  ;;  %s4218_s22 = smov %s3606_s27 }
 0x2d3   : > { %s4219_s23 = smov %s3596_s24  ;;  %19 = sbr.rel (!%p17_p8) target bundleno = 6 (0x6), region = 166 }
 0x2d8   :  { %2527 = vsyncpa [#allocation4], 1 }
 0x2d9   :  { %2529 = vsyncpa [#allocation4 + $0x1], 1 }
 0x2da   :  { %2530 = vsyncpa [#allocation6], 1 }

</bundles_post_ra>
